<compile_context>
chip_gen: v7x
topology: tpu7x:2x2x1
jax: 0.10.0
libtpu: 0.0.40
codegen_flags: <defaults>
</compile_context>

<pallas_src>
import functools

import jax
import jax.numpy as jnp
from jax.experimental import pallas as pl
from jax.experimental.pallas import tpu as pltpu

_VMEM_LIMIT = 32 * 1024 * 1024  # safe on v5e (16 MiB default) / v6e / v7x (64 MiB phys)


def _round_up(x, m):
    return (x + m - 1) // m * m


# ----------------------------- Pallas kernels -------------------------------

def _conv_mm_kernel(w_ref, x_ref, o_ref):
    # (Cout, K) @ (K, tn) on the MXU; bf16 inputs, fp32 accumulation.
    o_ref[...] = jnp.dot(w_ref[...], x_ref[...],
                         preferred_element_type=jnp.float32).astype(o_ref.dtype)


def matmul_cm(w_flat, cols, out_dtype=jnp.bfloat16, tn_cap=512):
    """Channel-major conv matmul: (Cout, K) @ (K, M) -> (Cout, M)."""
    Cout, K = w_flat.shape
    K2, M = cols.shape
    assert K == K2
    Coutp = _round_up(Cout, 8)          # sublane pad only (not 128)
    Kp = _round_up(K, 128)              # full-K single block
    tn = tn_cap if M >= tn_cap else _round_up(M, 128)
    Mp = _round_up(M, tn)
    a = jnp.pad(w_flat.astype(jnp.bfloat16), ((0, Coutp - Cout), (0, Kp - K)))
    b = jnp.pad(cols.astype(jnp.bfloat16), ((0, Kp - K), (0, Mp - M)))
    out = pl.pallas_call(
        _conv_mm_kernel,
        out_shape=jax.ShapeDtypeStruct((Coutp, Mp), out_dtype),
        grid_spec=pltpu.PrefetchScalarGridSpec(
            num_scalar_prefetch=0,
            grid=(Mp // tn,),
            in_specs=[pl.BlockSpec((Coutp, Kp), lambda j: (0, 0)),
                      pl.BlockSpec((Kp, tn), lambda j: (0, j))],
            out_specs=pl.BlockSpec((Coutp, tn), lambda j: (0, j))),
        compiler_params=pltpu.CompilerParams(
            dimension_semantics=("parallel",),
            vmem_limit_bytes=_VMEM_LIMIT),
    )(a, b)
    if Coutp != Cout or Mp != M:
        out = out[:Cout, :M]
    return out


def _bn_kernel(x_ref, g_ref, b_ref, o_ref, *, relu, inv_m):
    # One-pass batch statistics (sum, sum-of-squares) in fp32.
    x = x_ref[...].astype(jnp.float32)
    s = jnp.sum(x, axis=1, keepdims=True)
    ss = jnp.sum(x * x, axis=1, keepdims=True)
    mu = s * inv_m
    var = ss * inv_m - mu * mu
    y = (x - mu) * jax.lax.rsqrt(var + 1e-5)
    y = y * g_ref[...] + b_ref[...]
    if relu:
        y = jnp.maximum(y, 0.0)
    o_ref[...] = y.astype(o_ref.dtype)


def _bn_res_kernel(x_ref, g_ref, b_ref, r_ref, o_ref, *, inv_m):
    # BatchNorm (no ReLU) fused with the residual skip-add.
    x = x_ref[...].astype(jnp.float32)
    s = jnp.sum(x, axis=1, keepdims=True)
    ss = jnp.sum(x * x, axis=1, keepdims=True)
    mu = s * inv_m
    var = ss * inv_m - mu * mu
    y = (x - mu) * jax.lax.rsqrt(var + 1e-5)
    y = y * g_ref[...] + b_ref[...]
    o_ref[...] = (y + r_ref[...].astype(jnp.float32)).astype(o_ref.dtype)


def _bias_tanh_kernel(x_ref, b_ref, o_ref):
    o_ref[...] = jnp.tanh(x_ref[...].astype(jnp.float32) + b_ref[...])


def _channel_tile(C):
    if C % 16 == 0:
        return 16
    if C % 8 == 0:
        return 8
    return C


def batchnorm_cm(x_cm, gamma, beta, residual_cm=None, relu=True,
                 out_dtype=jnp.bfloat16):
    """Per-channel training-mode BatchNorm (+ReLU or +residual), gridded over C."""
    C, M = x_cm.shape
    tc = _channel_tile(C)
    g = gamma.reshape(C, 1).astype(jnp.float32)
    b = beta.reshape(C, 1).astype(jnp.float32)
    slab = pl.BlockSpec((tc, M), lambda i: (i, 0))
    vec = pl.BlockSpec((tc, 1), lambda i: (i, 0))
    in_specs = [slab, vec, vec]
    args = [x_cm, g, b]
    if residual_cm is not None:
        kernel = functools.partial(_bn_res_kernel, inv_m=1.0 / M)
        in_specs = in_specs + [slab]
        args = args + [residual_cm]
    else:
        kernel = functools.partial(_bn_kernel, relu=relu, inv_m=1.0 / M)
    return pl.pallas_call(
        kernel,
        out_shape=jax.ShapeDtypeStruct((C, M), out_dtype),
        grid_spec=pltpu.PrefetchScalarGridSpec(
            num_scalar_prefetch=0,
            grid=(C // tc,),
            in_specs=in_specs,
            out_specs=slab),
        compiler_params=pltpu.CompilerParams(
            dimension_semantics=("parallel",),
            vmem_limit_bytes=_VMEM_LIMIT),
    )(*args)


def bias_tanh_cm(x_cm, bias):
    C, M = x_cm.shape
    if M % 512 == 0:
        tn = 512
    elif M % 128 == 0:
        tn = 128
    else:
        tn = M
    return pl.pallas_call(
        _bias_tanh_kernel,
        out_shape=jax.ShapeDtypeStruct((C, M), jnp.float32),
        grid_spec=pltpu.PrefetchScalarGridSpec(
            num_scalar_prefetch=0,
            grid=(M // tn,),
            in_specs=[pl.BlockSpec((C, tn), lambda j: (0, j)),
                      pl.BlockSpec((C, 1), lambda j: (0, 0))],
            out_specs=pl.BlockSpec((C, tn), lambda j: (0, j))),
        compiler_params=pltpu.CompilerParams(
            dimension_semantics=("parallel",),
            vmem_limit_bytes=_VMEM_LIMIT),
    )(x_cm, bias.reshape(C, 1).astype(jnp.float32))


# ------------------------------ JAX glue -----------------------------------

def _im2col_cm(x_cf, KH, KW, stride, OH, OW):
    """Padded activation (C, N, Hp, Wp) -> channel-major rows (C*KH*KW, N*OH*OW)."""
    C, N, _, _ = x_cf.shape
    M = N * OH * OW
    cols = []
    for kh in range(KH):
        for kw in range(KW):
            sl = x_cf[:, :,
                      kh:kh + (OH - 1) * stride + 1:stride,
                      kw:kw + (OW - 1) * stride + 1:stride]   # (C, N, OH, OW)
            cols.append(sl.reshape(C, M))
    cols = jnp.stack(cols, axis=1)                            # (C, KH*KW, M)
    return cols.reshape(C * KH * KW, M)


def conv_cm(x_cf, w, stride, pad, pad_mode, out_dtype=jnp.bfloat16):
    """Channel-major conv: x (Cin, N, H, W), w (Cout, Cin, KH, KW) -> (Cout, M)."""
    if pad > 0:
        mode = "reflect" if pad_mode == "reflect" else "constant"
        x_cf = jnp.pad(x_cf, ((0, 0), (0, 0), (pad, pad), (pad, pad)), mode=mode)
    Cin, N, Hp, Wp = x_cf.shape
    Cout, _, KH, KW = w.shape
    OH = (Hp - KH) // stride + 1
    OW = (Wp - KW) // stride + 1
    cols = _im2col_cm(x_cf, KH, KW, stride, OH, OW)
    out = matmul_cm(w.reshape(Cout, -1), cols, out_dtype=out_dtype)
    return out, (N, OH, OW)


def conv_norm_relu_cm(x_cf, w, gamma, beta, *, stride, pad, pad_mode="zeros",
                      relu=True, residual_cm=None):
    out, (N, OH, OW) = conv_cm(x_cf, w, stride, pad, pad_mode)
    y = batchnorm_cm(out, gamma, beta, residual_cm=residual_cm, relu=relu)
    return y.reshape(-1, N, OH, OW)


def conv_transpose_norm_relu_cm(x_cf, w, gamma, beta):
    """3x3 ConvTranspose2d(stride=2, pad=1, output_pad=1) + BN + ReLU via
    sub-pixel decomposition: 4 stride-1 matmuls, no zero-dilation waste."""
    Cin, N, H, W = x_cf.shape
    _, Cout, KH, KW = w.shape          # PyTorch layout (Cin, Cout, KH, KW)
    assert (KH, KW) == (3, 3)
    M = N * H * W
    xp = jnp.pad(x_cf, ((0, 0), (0, 0), (0, 1), (0, 1)))
    x00 = x_cf.reshape(Cin, M)
    x01 = xp[:, :, :H, 1:].reshape(Cin, M)
    x10 = xp[:, :, 1:, :W].reshape(Cin, M)
    x11 = xp[:, :, 1:, 1:].reshape(Cin, M)

    def wt(kh, kw):
        return w[:, :, kh, kw].T       # (Cout, Cin)

    # Output phase (r, s) -> y[:, :, 2i+r, 2j+s]
    y00 = matmul_cm(wt(1, 1), x00)
    y01 = matmul_cm(jnp.concatenate([wt(1, 2), wt(1, 0)], axis=1),
                    jnp.concatenate([x00, x01], axis=0))
    y10 = matmul_cm(jnp.concatenate([wt(2, 1), wt(0, 1)], axis=1),
                    jnp.concatenate([x00, x10], axis=0))
    y11 = matmul_cm(jnp.concatenate([wt(2, 2), wt(2, 0), wt(0, 2), wt(0, 0)], axis=1),
                    jnp.concatenate([x00, x01, x10, x11], axis=0))

    def to4(y):
        return y.reshape(Cout, N, H, W)

    phases = jnp.stack([jnp.stack([to4(y00), to4(y01)], axis=0),
                        jnp.stack([to4(y10), to4(y11)], axis=0)], axis=0)
    # phases[r, s, c, n, i, j] -> y[c, n, 2i+r, 2j+s]
    y = phases.transpose(2, 3, 4, 0, 5, 1).reshape(Cout, N * 2 * H * 2 * W)
    y = batchnorm_cm(y, gamma, beta, relu=True)
    return y.reshape(Cout, N, 2 * H, 2 * W)


def final_conv_tanh_cm(x_cf, w, bias):
    out, (N, OH, OW) = conv_cm(x_cf, w, 1, 3, "reflect", out_dtype=jnp.float32)
    y = bias_tanh_cm(out, bias)
    return y.reshape(-1, N, OH, OW)


# --------------------------- model definition -------------------------------

def init_params(key, nz, nc, ngf, ng_blocks, n_downsampling):
    keys = iter(jax.random.split(key, 256))

    def conv_block(cin, cout, k):
        # NOTE: PyTorch uses Conv2d(bias=True) before BatchNorm; that bias is
        # mathematically cancelled by the mean subtraction, so it is omitted.
        w = jax.random.normal(next(keys), (cout, cin, k, k), jnp.float32) * 0.02
        return (w, jnp.ones((cout,), jnp.float32), jnp.zeros((cout,), jnp.float32))

    params = {"enc": [], "res": [], "dec": []}
    # encoder: reflect-pad3 + 7x7 conv, then n_downsampling stride-2 3x3 convs
    params["enc"].append(conv_block(nz, ngf, 7))
    for i in range(n_downsampling):
        mult = 2 ** i
        params["enc"].append(conv_block(ngf * mult, ngf * mult * 2, 3))
    # residual blocks
    mult = 2 ** n_downsampling
    for _ in range(ng_blocks):
        params["res"].append((conv_block(ngf * mult, ngf * mult, 3),
                              conv_block(ngf * mult, ngf * mult, 3)))
    # decoder: n_downsampling transpose convs (PyTorch weight layout Cin,Cout,KH,KW)
    for i in range(n_downsampling):
        mult = 2 ** (n_downsampling - i)
        cin, cout = ngf * mult, (ngf * mult) // 2
        w = jax.random.normal(next(keys), (cin, cout, 3, 3), jnp.float32) * 0.02
        params["dec"].append((w, jnp.ones((cout,), jnp.float32),
                              jnp.zeros((cout,), jnp.float32)))
    # final 7x7 reflect-pad conv to nc channels + tanh (bias kept: no BN after it)
    params["out_w"] = jax.random.normal(next(keys), (nc, ngf, 7, 7),
                                        jnp.float32) * 0.02
    params["out_b"] = jnp.zeros((nc,), jnp.float32)
    return params


def residual_generator_forward(x, params):
    # NCHW -> channel-major (C, N, H, W); carry bf16 activations throughout.
    h = jnp.transpose(x, (1, 0, 2, 3)).astype(jnp.bfloat16)
    # encoder
    w, g, b = params["enc"][0]
    h = conv_norm_relu_cm(h, w, g, b, stride=1, pad=3, pad_mode="reflect")
    for (w, g, b) in params["enc"][1:]:
        h = conv_norm_relu_cm(h, w, g, b, stride=2, pad=1, pad_mode="zeros")
    # transform (residual blocks)
    for (p1, p2) in params["res"]:
        skip = h
        w, g, b = p1
        t = conv_norm_relu_cm(skip, w, g, b, stride=1, pad=1,
                              pad_mode="reflect", relu=True)
        w, g, b = p2
        h = conv_norm_relu_cm(t, w, g, b, stride=1, pad=1, pad_mode="reflect",
                              relu=False,
                              residual_cm=skip.reshape(skip.shape[0], -1))
    # decoder
    for (w, g, b) in params["dec"]:
        h = conv_transpose_norm_relu_cm(h, w, g, b)
    y = final_conv_tanh_cm(h, params["out_w"], params["out_b"])   # (nc, N, H, W) f32
    return jnp.transpose(y, (1, 0, 2, 3))                          # back to NCHW


if __name__ == "__main__":
    nz, nc, ngf = 4, 3, 8
    ng_blocks, n_downsampling = 2, 2
    N, H, W = 2, 16, 16

    key = jax.random.PRNGKey(0)
    pkey, xkey = jax.random.split(key)
    params = init_params(pkey, nz, nc, ngf, ng_blocks, n_downsampling)
    x = jax.random.normal(xkey, (N, nz, H, W), jnp.float32)

    fwd = jax.jit(residual_generator_forward)
    y = jax.block_until_ready(fwd(x, params))

    assert y.shape == (N, nc, H, W), y.shape
    assert bool(jnp.all(jnp.isfinite(y)))
    assert bool(jnp.all(jnp.abs(y) <= 1.0 + 1e-6))  # tanh output range
    print("KERNEL_OK")
</pallas_src>

<mosaic_0001>
module attributes {stable_mosaic.version = 11 : i64} {
  func.func @_conv_mm_kernel(%arg0: i32, %arg1: memref<8x256xbf16, #tpu.memory_space<vmem>>, %arg2: memref<256x512xbf16, #tpu.memory_space<vmem>>, %arg3: memref<8x512xbf16, #tpu.memory_space<vmem>>) attributes {dimension_semantics = [#tpu.dimension_semantics<parallel>], iteration_bounds = array<i64: 1>, scalar_prefetch = 0 : i64, scratch_operands = 0 : i64, tpu.core_type = #tpu.core_type<tc>, window_params = [{pipeline_mode = #tpu.pipeline_mode<synchronous>, transform_indices = @transform_0, window_bounds = array<i64: 8, 256>}, {transform_indices = @transform_1, window_bounds = array<i64: 256, 512>}, {transform_indices = @transform_2, window_bounds = array<i64: 8, 512>}]} {
    %c0 = arith.constant 0 : index
    %c0_0 = arith.constant 0 : index
    %0 = vector.load %arg1[%c0, %c0_0] : memref<8x256xbf16, #tpu.memory_space<vmem>>, vector<8x256xbf16>
    %c0_1 = arith.constant 0 : index
    %c0_2 = arith.constant 0 : index
    %1 = vector.load %arg2[%c0_1, %c0_2] : memref<256x512xbf16, #tpu.memory_space<vmem>>, vector<256x512xbf16>
    %cst = arith.constant dense<0.000000e+00> : vector<8x512xf32>
    %2 = tpu.matmul %0, %1, %cst {dimension_numbers = #tpu.dot_dimension_numbers<[1], [0], [0], [1], [0, 0, 1, 1], [], []>} : vector<8x256xbf16>, vector<256x512xbf16>, vector<8x512xf32> -> vector<8x512xf32>
    %3 = arith.truncf %2 : vector<8x512xf32> to vector<8x512xbf16>
    %c0_3 = arith.constant 0 : index
    %c0_4 = arith.constant 0 : index
    %4 = vector.load %arg3[%c0_3, %c0_4] : memref<8x512xbf16, #tpu.memory_space<vmem>>, vector<8x512xbf16>
    tpu.vector_store %arg3[%c0_3, %c0_4], %3 {strides = array<i32>} : memref<8x512xbf16, #tpu.memory_space<vmem>>, vector<8x512xbf16>,
    return
  }
  func.func @transform_0(%arg0: i32) -> (i32, i32) {
    %c0_i32 = arith.constant 0 : i32
    %c0_i32_0 = arith.constant 0 : i32
    %c0_i32_1 = arith.constant 0 : i32
    return %c0_i32, %c0_i32_0 : i32, i32
  }
  func.func @transform_1(%arg0: i32) -> (i32, i32) {
    %c0_i32 = arith.constant 0 : i32
    %c0_i32_0 = arith.constant 0 : i32
    return %c0_i32, %arg0 : i32, i32
  }
  func.func @transform_2(%arg0: i32) -> (i32, i32) {
    %c0_i32 = arith.constant 0 : i32
    %c0_i32_0 = arith.constant 0 : i32
    return %c0_i32, %arg0 : i32, i32
  }
}

module attributes {stable_mosaic.version = 11 : i64} {
  func.func @_bn_kernel(%arg0: i32, %arg1: memref<8x512xbf16, #tpu.memory_space<vmem>>, %arg2: memref<8x1xf32, #tpu.memory_space<vmem>>, %arg3: memref<8x1xf32, #tpu.memory_space<vmem>>, %arg4: memref<8x512xbf16, #tpu.memory_space<vmem>>) attributes {dimension_semantics = [#tpu.dimension_semantics<parallel>], iteration_bounds = array<i64: 1>, scalar_prefetch = 0 : i64, scratch_operands = 0 : i64, tpu.core_type = #tpu.core_type<tc>, window_params = [{transform_indices = @transform_0, window_bounds = array<i64: 8, 512>}, {transform_indices = @transform_1, window_bounds = array<i64: 8, 1>}, {transform_indices = @transform_2, window_bounds = array<i64: 8, 1>}, {transform_indices = @transform_3, window_bounds = array<i64: 8, 512>}]} {
    %c0 = arith.constant 0 : index
    %c0_0 = arith.constant 0 : index
    %0 = vector.load %arg1[%c0, %c0_0] : memref<8x512xbf16, #tpu.memory_space<vmem>>, vector<8x512xbf16>
    %1 = arith.extf %0 : vector<8x512xbf16> to vector<8x512xf32>
    %cst = arith.constant dense<0.000000e+00> : vector<8xf32>
    %2 = vector.multi_reduction <add>, %1, %cst [1] : vector<8x512xf32> to vector<8xf32>
    %3 = vector.shape_cast %2 : vector<8xf32> to vector<8x1xf32>
    %4 = arith.mulf %1, %1 : vector<8x512xf32>
    %cst_1 = arith.constant dense<0.000000e+00> : vector<8xf32>
    %5 = vector.multi_reduction <add>, %4, %cst_1 [1] : vector<8x512xf32> to vector<8xf32>
    %6 = vector.shape_cast %5 : vector<8xf32> to vector<8x1xf32>
    %cst_2 = arith.constant 0.001953125 : f32
    %7 = vector.broadcast %cst_2 : f32 to vector<8x1xf32>
    %8 = arith.mulf %3, %7 : vector<8x1xf32>
    %cst_3 = arith.constant 0.001953125 : f32
    %9 = vector.broadcast %cst_3 : f32 to vector<8x1xf32>
    %10 = arith.mulf %6, %9 : vector<8x1xf32>
    %11 = arith.mulf %8, %8 : vector<8x1xf32>
    %12 = arith.subf %10, %11 : vector<8x1xf32>
    %13 = vector.broadcast %8 : vector<8x1xf32> to vector<8x512xf32>
    %14 = arith.subf %1, %13 : vector<8x512xf32>
    %cst_4 = arith.constant 9.99999974E-6 : f32
    %15 = vector.broadcast %cst_4 : f32 to vector<8x1xf32>
    %16 = arith.addf %12, %15 : vector<8x1xf32>
    %17 = math.rsqrt %16 : vector<8x1xf32>
    %18 = vector.broadcast %17 : vector<8x1xf32> to vector<8x512xf32>
    %19 = arith.mulf %14, %18 : vector<8x512xf32>
    %c0_5 = arith.constant 0 : index
    %c0_6 = arith.constant 0 : index
    %20 = vector.load %arg2[%c0_5, %c0_6] : memref<8x1xf32, #tpu.memory_space<vmem>>, vector<8x1xf32>
    %21 = vector.broadcast %20 : vector<8x1xf32> to vector<8x512xf32>
    %22 = arith.mulf %19, %21 : vector<8x512xf32>
    %c0_7 = arith.constant 0 : index
    %c0_8 = arith.constant 0 : index
    %23 = vector.load %arg3[%c0_7, %c0_8] : memref<8x1xf32, #tpu.memory_space<vmem>>, vector<8x1xf32>
    %24 = vector.broadcast %23 : vector<8x1xf32> to vector<8x512xf32>
    %25 = arith.addf %22, %24 : vector<8x512xf32>
    %cst_9 = arith.constant 0.000000e+00 : f32
    %26 = vector.broadcast %cst_9 : f32 to vector<8x512xf32>
    %27 = arith.maximumf %25, %26 : vector<8x512xf32>
    %28 = arith.truncf %27 : vector<8x512xf32> to vector<8x512xbf16>
    %c0_10 = arith.constant 0 : index
    %c0_11 = arith.constant 0 : index
    %29 = vector.load %arg4[%c0_10, %c0_11] : memref<8x512xbf16, #tpu.memory_space<vmem>>, vector<8x512xbf16>
    tpu.vector_store %arg4[%c0_10, %c0_11], %28 {strides = array<i32>} : memref<8x512xbf16, #tpu.memory_space<vmem>>, vector<8x512xbf16>,
    return
  }
  func.func @transform_0(%arg0: i32) -> (i32, i32) {
    %c0_i32 = arith.constant 0 : i32
    %c0_i32_0 = arith.constant 0 : i32
    return %arg0, %c0_i32 : i32, i32
  }
  func.func @transform_1(%arg0: i32) -> (i32, i32) {
    %c0_i32 = arith.constant 0 : i32
    %c0_i32_0 = arith.constant 0 : i32
    return %arg0, %c0_i32 : i32, i32
  }
  func.func @transform_2(%arg0: i32) -> (i32, i32) {
    %c0_i32 = arith.constant 0 : i32
    %c0_i32_0 = arith.constant 0 : i32
    return %arg0, %c0_i32 : i32, i32
  }
  func.func @transform_3(%arg0: i32) -> (i32, i32) {
    %c0_i32 = arith.constant 0 : i32
    %c0_i32_0 = arith.constant 0 : i32
    return %arg0, %c0_i32 : i32, i32
  }
}

module attributes {stable_mosaic.version = 11 : i64} {
  func.func @_conv_mm_kernel(%arg0: i32, %arg1: memref<16x128xbf16, #tpu.memory_space<vmem>>, %arg2: memref<128x128xbf16, #tpu.memory_space<vmem>>, %arg3: memref<16x128xbf16, #tpu.memory_space<vmem>>) attributes {dimension_semantics = [#tpu.dimension_semantics<parallel>], iteration_bounds = array<i64: 1>, scalar_prefetch = 0 : i64, scratch_operands = 0 : i64, tpu.core_type = #tpu.core_type<tc>, window_params = [{pipeline_mode = #tpu.pipeline_mode<synchronous>, transform_indices = @transform_0, window_bounds = array<i64: 16, 128>}, {transform_indices = @transform_1, window_bounds = array<i64: 128, 128>}, {transform_indices = @transform_2, window_bounds = array<i64: 16, 128>}]} {
    %c0 = arith.constant 0 : index
    %c0_0 = arith.constant 0 : index
    %0 = vector.load %arg1[%c0, %c0_0] : memref<16x128xbf16, #tpu.memory_space<vmem>>, vector<16x128xbf16>
    %c0_1 = arith.constant 0 : index
    %c0_2 = arith.constant 0 : index
    %1 = vector.load %arg2[%c0_1, %c0_2] : memref<128x128xbf16, #tpu.memory_space<vmem>>, vector<128x128xbf16>
    %cst = arith.constant dense<0.000000e+00> : vector<16x128xf32>
    %2 = tpu.matmul %0, %1, %cst {dimension_numbers = #tpu.dot_dimension_numbers<[1], [0], [0], [1], [0, 0, 1, 1], [], []>} : vector<16x128xbf16>, vector<128x128xbf16>, vector<16x128xf32> -> vector<16x128xf32>
    %3 = arith.truncf %2 : vector<16x128xf32> to vector<16x128xbf16>
    %c0_3 = arith.constant 0 : index
    %c0_4 = arith.constant 0 : index
    %4 = vector.load %arg3[%c0_3, %c0_4] : memref<16x128xbf16, #tpu.memory_space<vmem>>, vector<16x128xbf16>
    tpu.vector_store %arg3[%c0_3, %c0_4], %3 {strides = array<i32>} : memref<16x128xbf16, #tpu.memory_space<vmem>>, vector<16x128xbf16>,
    return
  }
  func.func @transform_0(%arg0: i32) -> (i32, i32) {
    %c0_i32 = arith.constant 0 : i32
    %c0_i32_0 = arith.constant 0 : i32
    %c0_i32_1 = arith.constant 0 : i32
    return %c0_i32, %c0_i32_0 : i32, i32
  }
  func.func @transform_1(%arg0: i32) -> (i32, i32) {
    %c0_i32 = arith.constant 0 : i32
    %c0_i32_0 = arith.constant 0 : i32
    return %c0_i32, %arg0 : i32, i32
  }
  func.func @transform_2(%arg0: i32) -> (i32, i32) {
    %c0_i32 = arith.constant 0 : i32
    %c0_i32_0 = arith.constant 0 : i32
    return %c0_i32, %arg0 : i32, i32
  }
}

module attributes {stable_mosaic.version = 11 : i64} {
  func.func @_bn_kernel(%arg0: i32, %arg1: memref<16x128xbf16, #tpu.memory_space<vmem>>, %arg2: memref<16x1xf32, #tpu.memory_space<vmem>>, %arg3: memref<16x1xf32, #tpu.memory_space<vmem>>, %arg4: memref<16x128xbf16, #tpu.memory_space<vmem>>) attributes {dimension_semantics = [#tpu.dimension_semantics<parallel>], iteration_bounds = array<i64: 1>, scalar_prefetch = 0 : i64, scratch_operands = 0 : i64, tpu.core_type = #tpu.core_type<tc>, window_params = [{transform_indices = @transform_0, window_bounds = array<i64: 16, 128>}, {transform_indices = @transform_1, window_bounds = array<i64: 16, 1>}, {transform_indices = @transform_2, window_bounds = array<i64: 16, 1>}, {transform_indices = @transform_3, window_bounds = array<i64: 16, 128>}]} {
    %c0 = arith.constant 0 : index
    %c0_0 = arith.constant 0 : index
    %0 = vector.load %arg1[%c0, %c0_0] : memref<16x128xbf16, #tpu.memory_space<vmem>>, vector<16x128xbf16>
    %1 = arith.extf %0 : vector<16x128xbf16> to vector<16x128xf32>
    %cst = arith.constant dense<0.000000e+00> : vector<16xf32>
    %2 = vector.multi_reduction <add>, %1, %cst [1] : vector<16x128xf32> to vector<16xf32>
    %3 = vector.shape_cast %2 : vector<16xf32> to vector<16x1xf32>
    %4 = arith.mulf %1, %1 : vector<16x128xf32>
    %cst_1 = arith.constant dense<0.000000e+00> : vector<16xf32>
    %5 = vector.multi_reduction <add>, %4, %cst_1 [1] : vector<16x128xf32> to vector<16xf32>
    %6 = vector.shape_cast %5 : vector<16xf32> to vector<16x1xf32>
    %cst_2 = arith.constant 7.812500e-03 : f32
    %7 = vector.broadcast %cst_2 : f32 to vector<16x1xf32>
    %8 = arith.mulf %3, %7 : vector<16x1xf32>
    %cst_3 = arith.constant 7.812500e-03 : f32
    %9 = vector.broadcast %cst_3 : f32 to vector<16x1xf32>
    %10 = arith.mulf %6, %9 : vector<16x1xf32>
    %11 = arith.mulf %8, %8 : vector<16x1xf32>
    %12 = arith.subf %10, %11 : vector<16x1xf32>
    %13 = vector.broadcast %8 : vector<16x1xf32> to vector<16x128xf32>
    %14 = arith.subf %1, %13 : vector<16x128xf32>
    %cst_4 = arith.constant 9.99999974E-6 : f32
    %15 = vector.broadcast %cst_4 : f32 to vector<16x1xf32>
    %16 = arith.addf %12, %15 : vector<16x1xf32>
    %17 = math.rsqrt %16 : vector<16x1xf32>
    %18 = vector.broadcast %17 : vector<16x1xf32> to vector<16x128xf32>
    %19 = arith.mulf %14, %18 : vector<16x128xf32>
    %c0_5 = arith.constant 0 : index
    %c0_6 = arith.constant 0 : index
    %20 = vector.load %arg2[%c0_5, %c0_6] : memref<16x1xf32, #tpu.memory_space<vmem>>, vector<16x1xf32>
    %21 = vector.broadcast %20 : vector<16x1xf32> to vector<16x128xf32>
    %22 = arith.mulf %19, %21 : vector<16x128xf32>
    %c0_7 = arith.constant 0 : index
    %c0_8 = arith.constant 0 : index
    %23 = vector.load %arg3[%c0_7, %c0_8] : memref<16x1xf32, #tpu.memory_space<vmem>>, vector<16x1xf32>
    %24 = vector.broadcast %23 : vector<16x1xf32> to vector<16x128xf32>
    %25 = arith.addf %22, %24 : vector<16x128xf32>
    %cst_9 = arith.constant 0.000000e+00 : f32
    %26 = vector.broadcast %cst_9 : f32 to vector<16x128xf32>
    %27 = arith.maximumf %25, %26 : vector<16x128xf32>
    %28 = arith.truncf %27 : vector<16x128xf32> to vector<16x128xbf16>
    %c0_10 = arith.constant 0 : index
    %c0_11 = arith.constant 0 : index
    %29 = vector.load %arg4[%c0_10, %c0_11] : memref<16x128xbf16, #tpu.memory_space<vmem>>, vector<16x128xbf16>
    tpu.vector_store %arg4[%c0_10, %c0_11], %28 {strides = array<i32>} : memref<16x128xbf16, #tpu.memory_space<vmem>>, vector<16x128xbf16>,
    return
  }
  func.func @transform_0(%arg0: i32) -> (i32, i32) {
    %c0_i32 = arith.constant 0 : i32
    %c0_i32_0 = arith.constant 0 : i32
    return %arg0, %c0_i32 : i32, i32
  }
  func.func @transform_1(%arg0: i32) -> (i32, i32) {
    %c0_i32 = arith.constant 0 : i32
    %c0_i32_0 = arith.constant 0 : i32
    return %arg0, %c0_i32 : i32, i32
  }
  func.func @transform_2(%arg0: i32) -> (i32, i32) {
    %c0_i32 = arith.constant 0 : i32
    %c0_i32_0 = arith.constant 0 : i32
    return %arg0, %c0_i32 : i32, i32
  }
  func.func @transform_3(%arg0: i32) -> (i32, i32) {
    %c0_i32 = arith.constant 0 : i32
    %c0_i32_0 = arith.constant 0 : i32
    return %arg0, %c0_i32 : i32, i32
  }
}

module attributes {stable_mosaic.version = 11 : i64} {
  func.func @_conv_mm_kernel(%arg0: i32, %arg1: memref<32x256xbf16, #tpu.memory_space<vmem>>, %arg2: memref<256x128xbf16, #tpu.memory_space<vmem>>, %arg3: memref<32x128xbf16, #tpu.memory_space<vmem>>) attributes {dimension_semantics = [#tpu.dimension_semantics<parallel>], iteration_bounds = array<i64: 1>, scalar_prefetch = 0 : i64, scratch_operands = 0 : i64, tpu.core_type = #tpu.core_type<tc>, window_params = [{pipeline_mode = #tpu.pipeline_mode<synchronous>, transform_indices = @transform_0, window_bounds = array<i64: 32, 256>}, {transform_indices = @transform_1, window_bounds = array<i64: 256, 128>}, {transform_indices = @transform_2, window_bounds = array<i64: 32, 128>}]} {
    %c0 = arith.constant 0 : index
    %c0_0 = arith.constant 0 : index
    %0 = vector.load %arg1[%c0, %c0_0] : memref<32x256xbf16, #tpu.memory_space<vmem>>, vector<32x256xbf16>
    %c0_1 = arith.constant 0 : index
    %c0_2 = arith.constant 0 : index
    %1 = vector.load %arg2[%c0_1, %c0_2] : memref<256x128xbf16, #tpu.memory_space<vmem>>, vector<256x128xbf16>
    %cst = arith.constant dense<0.000000e+00> : vector<32x128xf32>
    %2 = tpu.matmul %0, %1, %cst {dimension_numbers = #tpu.dot_dimension_numbers<[1], [0], [0], [1], [0, 0, 1, 1], [], []>} : vector<32x256xbf16>, vector<256x128xbf16>, vector<32x128xf32> -> vector<32x128xf32>
    %3 = arith.truncf %2 : vector<32x128xf32> to vector<32x128xbf16>
    %c0_3 = arith.constant 0 : index
    %c0_4 = arith.constant 0 : index
    %4 = vector.load %arg3[%c0_3, %c0_4] : memref<32x128xbf16, #tpu.memory_space<vmem>>, vector<32x128xbf16>
    tpu.vector_store %arg3[%c0_3, %c0_4], %3 {strides = array<i32>} : memref<32x128xbf16, #tpu.memory_space<vmem>>, vector<32x128xbf16>,
    return
  }
  func.func @transform_0(%arg0: i32) -> (i32, i32) {
    %c0_i32 = arith.constant 0 : i32
    %c0_i32_0 = arith.constant 0 : i32
    %c0_i32_1 = arith.constant 0 : i32
    return %c0_i32, %c0_i32_0 : i32, i32
  }
  func.func @transform_1(%arg0: i32) -> (i32, i32) {
    %c0_i32 = arith.constant 0 : i32
    %c0_i32_0 = arith.constant 0 : i32
    return %c0_i32, %arg0 : i32, i32
  }
  func.func @transform_2(%arg0: i32) -> (i32, i32) {
    %c0_i32 = arith.constant 0 : i32
    %c0_i32_0 = arith.constant 0 : i32
    return %c0_i32, %arg0 : i32, i32
  }
}

module attributes {stable_mosaic.version = 11 : i64} {
  func.func @_bn_kernel(%arg0: i32, %arg1: memref<16x32xbf16, #tpu.memory_space<vmem>>, %arg2: memref<16x1xf32, #tpu.memory_space<vmem>>, %arg3: memref<16x1xf32, #tpu.memory_space<vmem>>, %arg4: memref<16x32xbf16, #tpu.memory_space<vmem>>) attributes {dimension_semantics = [#tpu.dimension_semantics<parallel>], iteration_bounds = array<i64: 2>, scalar_prefetch = 0 : i64, scratch_operands = 0 : i64, tpu.core_type = #tpu.core_type<tc>, window_params = [{transform_indices = @transform_0, window_bounds = array<i64: 16, 32>}, {transform_indices = @transform_1, window_bounds = array<i64: 16, 1>}, {transform_indices = @transform_2, window_bounds = array<i64: 16, 1>}, {transform_indices = @transform_3, window_bounds = array<i64: 16, 32>}]} {
    %c0 = arith.constant 0 : index
    %c0_0 = arith.constant 0 : index
    %0 = vector.load %arg1[%c0, %c0_0] : memref<16x32xbf16, #tpu.memory_space<vmem>>, vector<16x32xbf16>
    %1 = arith.extf %0 : vector<16x32xbf16> to vector<16x32xf32>
    %cst = arith.constant dense<0.000000e+00> : vector<16xf32>
    %2 = vector.multi_reduction <add>, %1, %cst [1] : vector<16x32xf32> to vector<16xf32>
    %3 = vector.shape_cast %2 : vector<16xf32> to vector<16x1xf32>
    %4 = arith.mulf %1, %1 : vector<16x32xf32>
    %cst_1 = arith.constant dense<0.000000e+00> : vector<16xf32>
    %5 = vector.multi_reduction <add>, %4, %cst_1 [1] : vector<16x32xf32> to vector<16xf32>
    %6 = vector.shape_cast %5 : vector<16xf32> to vector<16x1xf32>
    %cst_2 = arith.constant 3.125000e-02 : f32
    %7 = vector.broadcast %cst_2 : f32 to vector<16x1xf32>
    %8 = arith.mulf %3, %7 : vector<16x1xf32>
    %cst_3 = arith.constant 3.125000e-02 : f32
    %9 = vector.broadcast %cst_3 : f32 to vector<16x1xf32>
    %10 = arith.mulf %6, %9 : vector<16x1xf32>
    %11 = arith.mulf %8, %8 : vector<16x1xf32>
    %12 = arith.subf %10, %11 : vector<16x1xf32>
    %13 = vector.broadcast %8 : vector<16x1xf32> to vector<16x32xf32>
    %14 = arith.subf %1, %13 : vector<16x32xf32>
    %cst_4 = arith.constant 9.99999974E-6 : f32
    %15 = vector.broadcast %cst_4 : f32 to vector<16x1xf32>
    %16 = arith.addf %12, %15 : vector<16x1xf32>
    %17 = math.rsqrt %16 : vector<16x1xf32>
    %18 = vector.broadcast %17 : vector<16x1xf32> to vector<16x32xf32>
    %19 = arith.mulf %14, %18 : vector<16x32xf32>
    %c0_5 = arith.constant 0 : index
    %c0_6 = arith.constant 0 : index
    %20 = vector.load %arg2[%c0_5, %c0_6] : memref<16x1xf32, #tpu.memory_space<vmem>>, vector<16x1xf32>
    %21 = vector.broadcast %20 : vector<16x1xf32> to vector<16x32xf32>
    %22 = arith.mulf %19, %21 : vector<16x32xf32>
    %c0_7 = arith.constant 0 : index
    %c0_8 = arith.constant 0 : index
    %23 = vector.load %arg3[%c0_7, %c0_8] : memref<16x1xf32, #tpu.memory_space<vmem>>, vector<16x1xf32>
    %24 = vector.broadcast %23 : vector<16x1xf32> to vector<16x32xf32>
    %25 = arith.addf %22, %24 : vector<16x32xf32>
    %cst_9 = arith.constant 0.000000e+00 : f32
    %26 = vector.broadcast %cst_9 : f32 to vector<16x32xf32>
    %27 = arith.maximumf %25, %26 : vector<16x32xf32>
    %28 = arith.truncf %27 : vector<16x32xf32> to vector<16x32xbf16>
    %c0_10 = arith.constant 0 : index
    %c0_11 = arith.constant 0 : index
    %29 = vector.load %arg4[%c0_10, %c0_11] : memref<16x32xbf16, #tpu.memory_space<vmem>>, vector<16x32xbf16>
    tpu.vector_store %arg4[%c0_10, %c0_11], %28 {strides = array<i32>} : memref<16x32xbf16, #tpu.memory_space<vmem>>, vector<16x32xbf16>,
    return
  }
  func.func @transform_0(%arg0: i32) -> (i32, i32) {
    %c0_i32 = arith.constant 0 : i32
    %c0_i32_0 = arith.constant 0 : i32
    return %arg0, %c0_i32 : i32, i32
  }
  func.func @transform_1(%arg0: i32) -> (i32, i32) {
    %c0_i32 = arith.constant 0 : i32
    %c0_i32_0 = arith.constant 0 : i32
    return %arg0, %c0_i32 : i32, i32
  }
  func.func @transform_2(%arg0: i32) -> (i32, i32) {
    %c0_i32 = arith.constant 0 : i32
    %c0_i32_0 = arith.constant 0 : i32
    return %arg0, %c0_i32 : i32, i32
  }
  func.func @transform_3(%arg0: i32) -> (i32, i32) {
    %c0_i32 = arith.constant 0 : i32
    %c0_i32_0 = arith.constant 0 : i32
    return %arg0, %c0_i32 : i32, i32
  }
}

module attributes {stable_mosaic.version = 11 : i64} {
  func.func @_conv_mm_kernel(%arg0: i32, %arg1: memref<32x384xbf16, #tpu.memory_space<vmem>>, %arg2: memref<384x128xbf16, #tpu.memory_space<vmem>>, %arg3: memref<32x128xbf16, #tpu.memory_space<vmem>>) attributes {dimension_semantics = [#tpu.dimension_semantics<parallel>], iteration_bounds = array<i64: 1>, scalar_prefetch = 0 : i64, scratch_operands = 0 : i64, tpu.core_type = #tpu.core_type<tc>, window_params = [{pipeline_mode = #tpu.pipeline_mode<synchronous>, transform_indices = @transform_0, window_bounds = array<i64: 32, 384>}, {transform_indices = @transform_1, window_bounds = array<i64: 384, 128>}, {transform_indices = @transform_2, window_bounds = array<i64: 32, 128>}]} {
    %c0 = arith.constant 0 : index
    %c0_0 = arith.constant 0 : index
    %0 = vector.load %arg1[%c0, %c0_0] : memref<32x384xbf16, #tpu.memory_space<vmem>>, vector<32x384xbf16>
    %c0_1 = arith.constant 0 : index
    %c0_2 = arith.constant 0 : index
    %1 = vector.load %arg2[%c0_1, %c0_2] : memref<384x128xbf16, #tpu.memory_space<vmem>>, vector<384x128xbf16>
    %cst = arith.constant dense<0.000000e+00> : vector<32x128xf32>
    %2 = tpu.matmul %0, %1, %cst {dimension_numbers = #tpu.dot_dimension_numbers<[1], [0], [0], [1], [0, 0, 1, 1], [], []>} : vector<32x384xbf16>, vector<384x128xbf16>, vector<32x128xf32> -> vector<32x128xf32>
    %3 = arith.truncf %2 : vector<32x128xf32> to vector<32x128xbf16>
    %c0_3 = arith.constant 0 : index
    %c0_4 = arith.constant 0 : index
    %4 = vector.load %arg3[%c0_3, %c0_4] : memref<32x128xbf16, #tpu.memory_space<vmem>>, vector<32x128xbf16>
    tpu.vector_store %arg3[%c0_3, %c0_4], %3 {strides = array<i32>} : memref<32x128xbf16, #tpu.memory_space<vmem>>, vector<32x128xbf16>,
    return
  }
  func.func @transform_0(%arg0: i32) -> (i32, i32) {
    %c0_i32 = arith.constant 0 : i32
    %c0_i32_0 = arith.constant 0 : i32
    %c0_i32_1 = arith.constant 0 : i32
    return %c0_i32, %c0_i32_0 : i32, i32
  }
  func.func @transform_1(%arg0: i32) -> (i32, i32) {
    %c0_i32 = arith.constant 0 : i32
    %c0_i32_0 = arith.constant 0 : i32
    return %c0_i32, %arg0 : i32, i32
  }
  func.func @transform_2(%arg0: i32) -> (i32, i32) {
    %c0_i32 = arith.constant 0 : i32
    %c0_i32_0 = arith.constant 0 : i32
    return %c0_i32, %arg0 : i32, i32
  }
}

module attributes {stable_mosaic.version = 11 : i64} {
  func.func @_bn_res_kernel(%arg0: i32, %arg1: memref<16x32xbf16, #tpu.memory_space<vmem>>, %arg2: memref<16x1xf32, #tpu.memory_space<vmem>>, %arg3: memref<16x1xf32, #tpu.memory_space<vmem>>, %arg4: memref<16x32xbf16, #tpu.memory_space<vmem>>, %arg5: memref<16x32xbf16, #tpu.memory_space<vmem>>) attributes {dimension_semantics = [#tpu.dimension_semantics<parallel>], iteration_bounds = array<i64: 2>, scalar_prefetch = 0 : i64, scratch_operands = 0 : i64, tpu.core_type = #tpu.core_type<tc>, window_params = [{transform_indices = @transform_0, window_bounds = array<i64: 16, 32>}, {transform_indices = @transform_1, window_bounds = array<i64: 16, 1>}, {transform_indices = @transform_2, window_bounds = array<i64: 16, 1>}, {transform_indices = @transform_3, window_bounds = array<i64: 16, 32>}, {transform_indices = @transform_4, window_bounds = array<i64: 16, 32>}]} {
    %c0 = arith.constant 0 : index
    %c0_0 = arith.constant 0 : index
    %0 = vector.load %arg1[%c0, %c0_0] : memref<16x32xbf16, #tpu.memory_space<vmem>>, vector<16x32xbf16>
    %1 = arith.extf %0 : vector<16x32xbf16> to vector<16x32xf32>
    %cst = arith.constant dense<0.000000e+00> : vector<16xf32>
    %2 = vector.multi_reduction <add>, %1, %cst [1] : vector<16x32xf32> to vector<16xf32>
    %3 = vector.shape_cast %2 : vector<16xf32> to vector<16x1xf32>
    %4 = arith.mulf %1, %1 : vector<16x32xf32>
    %cst_1 = arith.constant dense<0.000000e+00> : vector<16xf32>
    %5 = vector.multi_reduction <add>, %4, %cst_1 [1] : vector<16x32xf32> to vector<16xf32>
    %6 = vector.shape_cast %5 : vector<16xf32> to vector<16x1xf32>
    %cst_2 = arith.constant 3.125000e-02 : f32
    %7 = vector.broadcast %cst_2 : f32 to vector<16x1xf32>
    %8 = arith.mulf %3, %7 : vector<16x1xf32>
    %cst_3 = arith.constant 3.125000e-02 : f32
    %9 = vector.broadcast %cst_3 : f32 to vector<16x1xf32>
    %10 = arith.mulf %6, %9 : vector<16x1xf32>
    %11 = arith.mulf %8, %8 : vector<16x1xf32>
    %12 = arith.subf %10, %11 : vector<16x1xf32>
    %13 = vector.broadcast %8 : vector<16x1xf32> to vector<16x32xf32>
    %14 = arith.subf %1, %13 : vector<16x32xf32>
    %cst_4 = arith.constant 9.99999974E-6 : f32
    %15 = vector.broadcast %cst_4 : f32 to vector<16x1xf32>
    %16 = arith.addf %12, %15 : vector<16x1xf32>
    %17 = math.rsqrt %16 : vector<16x1xf32>
    %18 = vector.broadcast %17 : vector<16x1xf32> to vector<16x32xf32>
    %19 = arith.mulf %14, %18 : vector<16x32xf32>
    %c0_5 = arith.constant 0 : index
    %c0_6 = arith.constant 0 : index
    %20 = vector.load %arg2[%c0_5, %c0_6] : memref<16x1xf32, #tpu.memory_space<vmem>>, vector<16x1xf32>
    %21 = vector.broadcast %20 : vector<16x1xf32> to vector<16x32xf32>
    %22 = arith.mulf %19, %21 : vector<16x32xf32>
    %c0_7 = arith.constant 0 : index
    %c0_8 = arith.constant 0 : index
    %23 = vector.load %arg3[%c0_7, %c0_8] : memref<16x1xf32, #tpu.memory_space<vmem>>, vector<16x1xf32>
    %24 = vector.broadcast %23 : vector<16x1xf32> to vector<16x32xf32>
    %25 = arith.addf %22, %24 : vector<16x32xf32>
    %c0_9 = arith.constant 0 : index
    %c0_10 = arith.constant 0 : index
    %26 = vector.load %arg4[%c0_9, %c0_10] : memref<16x32xbf16, #tpu.memory_space<vmem>>, vector<16x32xbf16>
    %27 = arith.extf %26 : vector<16x32xbf16> to vector<16x32xf32>
    %28 = arith.addf %25, %27 : vector<16x32xf32>
    %29 = arith.truncf %28 : vector<16x32xf32> to vector<16x32xbf16>
    %c0_11 = arith.constant 0 : index
    %c0_12 = arith.constant 0 : index
    %30 = vector.load %arg5[%c0_11, %c0_12] : memref<16x32xbf16, #tpu.memory_space<vmem>>, vector<16x32xbf16>
    tpu.vector_store %arg5[%c0_11, %c0_12], %29 {strides = array<i32>} : memref<16x32xbf16, #tpu.memory_space<vmem>>, vector<16x32xbf16>,
    return
  }
  func.func @transform_0(%arg0: i32) -> (i32, i32) {
    %c0_i32 = arith.constant 0 : i32
    %c0_i32_0 = arith.constant 0 : i32
    return %arg0, %c0_i32 : i32, i32
  }
  func.func @transform_1(%arg0: i32) -> (i32, i32) {
    %c0_i32 = arith.constant 0 : i32
    %c0_i32_0 = arith.constant 0 : i32
    return %arg0, %c0_i32 : i32, i32
  }
  func.func @transform_2(%arg0: i32) -> (i32, i32) {
    %c0_i32 = arith.constant 0 : i32
    %c0_i32_0 = arith.constant 0 : i32
    return %arg0, %c0_i32 : i32, i32
  }
  func.func @transform_3(%arg0: i32) -> (i32, i32) {
    %c0_i32 = arith.constant 0 : i32
    %c0_i32_0 = arith.constant 0 : i32
    return %arg0, %c0_i32 : i32, i32
  }
  func.func @transform_4(%arg0: i32) -> (i32, i32) {
    %c0_i32 = arith.constant 0 : i32
    %c0_i32_0 = arith.constant 0 : i32
    return %arg0, %c0_i32 : i32, i32
  }
}

module attributes {stable_mosaic.version = 11 : i64} {
  func.func @_conv_mm_kernel(%arg0: i32, %arg1: memref<8x128xbf16, #tpu.memory_space<vmem>>, %arg2: memref<128x128xbf16, #tpu.memory_space<vmem>>, %arg3: memref<8x128xbf16, #tpu.memory_space<vmem>>) attributes {dimension_semantics = [#tpu.dimension_semantics<parallel>], iteration_bounds = array<i64: 1>, scalar_prefetch = 0 : i64, scratch_operands = 0 : i64, tpu.core_type = #tpu.core_type<tc>, window_params = [{pipeline_mode = #tpu.pipeline_mode<synchronous>, transform_indices = @transform_0, window_bounds = array<i64: 8, 128>}, {transform_indices = @transform_1, window_bounds = array<i64: 128, 128>}, {transform_indices = @transform_2, window_bounds = array<i64: 8, 128>}]} {
    %c0 = arith.constant 0 : index
    %c0_0 = arith.constant 0 : index
    %0 = vector.load %arg1[%c0, %c0_0] : memref<8x128xbf16, #tpu.memory_space<vmem>>, vector<8x128xbf16>
    %c0_1 = arith.constant 0 : index
    %c0_2 = arith.constant 0 : index
    %1 = vector.load %arg2[%c0_1, %c0_2] : memref<128x128xbf16, #tpu.memory_space<vmem>>, vector<128x128xbf16>
    %cst = arith.constant dense<0.000000e+00> : vector<8x128xf32>
    %2 = tpu.matmul %0, %1, %cst {dimension_numbers = #tpu.dot_dimension_numbers<[1], [0], [0], [1], [0, 0, 1, 1], [], []>} : vector<8x128xbf16>, vector<128x128xbf16>, vector<8x128xf32> -> vector<8x128xf32>
    %3 = arith.truncf %2 : vector<8x128xf32> to vector<8x128xbf16>
    %c0_3 = arith.constant 0 : index
    %c0_4 = arith.constant 0 : index
    %4 = vector.load %arg3[%c0_3, %c0_4] : memref<8x128xbf16, #tpu.memory_space<vmem>>, vector<8x128xbf16>
    tpu.vector_store %arg3[%c0_3, %c0_4], %3 {strides = array<i32>} : memref<8x128xbf16, #tpu.memory_space<vmem>>, vector<8x128xbf16>,
    return
  }
  func.func @transform_0(%arg0: i32) -> (i32, i32) {
    %c0_i32 = arith.constant 0 : i32
    %c0_i32_0 = arith.constant 0 : i32
    %c0_i32_1 = arith.constant 0 : i32
    return %c0_i32, %c0_i32_0 : i32, i32
  }
  func.func @transform_1(%arg0: i32) -> (i32, i32) {
    %c0_i32 = arith.constant 0 : i32
    %c0_i32_0 = arith.constant 0 : i32
    return %c0_i32, %arg0 : i32, i32
  }
  func.func @transform_2(%arg0: i32) -> (i32, i32) {
    %c0_i32 = arith.constant 0 : i32
    %c0_i32_0 = arith.constant 0 : i32
    return %c0_i32, %arg0 : i32, i32
  }
}

module attributes {stable_mosaic.version = 11 : i64} {
  func.func @_conv_mm_kernel(%arg0: i32, %arg1: memref<8x512xbf16, #tpu.memory_space<vmem>>, %arg2: memref<512x512xbf16, #tpu.memory_space<vmem>>, %arg3: memref<8x512xf32, #tpu.memory_space<vmem>>) attributes {dimension_semantics = [#tpu.dimension_semantics<parallel>], iteration_bounds = array<i64: 1>, scalar_prefetch = 0 : i64, scratch_operands = 0 : i64, tpu.core_type = #tpu.core_type<tc>, window_params = [{pipeline_mode = #tpu.pipeline_mode<synchronous>, transform_indices = @transform_0, window_bounds = array<i64: 8, 512>}, {transform_indices = @transform_1, window_bounds = array<i64: 512, 512>}, {transform_indices = @transform_2, window_bounds = array<i64: 8, 512>}]} {
    %c0 = arith.constant 0 : index
    %c0_0 = arith.constant 0 : index
    %0 = vector.load %arg1[%c0, %c0_0] : memref<8x512xbf16, #tpu.memory_space<vmem>>, vector<8x512xbf16>
    %c0_1 = arith.constant 0 : index
    %c0_2 = arith.constant 0 : index
    %1 = vector.load %arg2[%c0_1, %c0_2] : memref<512x512xbf16, #tpu.memory_space<vmem>>, vector<512x512xbf16>
    %cst = arith.constant dense<0.000000e+00> : vector<8x512xf32>
    %2 = tpu.matmul %0, %1, %cst {dimension_numbers = #tpu.dot_dimension_numbers<[1], [0], [0], [1], [0, 0, 1, 1], [], []>} : vector<8x512xbf16>, vector<512x512xbf16>, vector<8x512xf32> -> vector<8x512xf32>
    %c0_3 = arith.constant 0 : index
    %c0_4 = arith.constant 0 : index
    %3 = vector.load %arg3[%c0_3, %c0_4] : memref<8x512xf32, #tpu.memory_space<vmem>>, vector<8x512xf32>
    tpu.vector_store %arg3[%c0_3, %c0_4], %2 {strides = array<i32>} : memref<8x512xf32, #tpu.memory_space<vmem>>, vector<8x512xf32>,
    return
  }
  func.func @transform_0(%arg0: i32) -> (i32, i32) {
    %c0_i32 = arith.constant 0 : i32
    %c0_i32_0 = arith.constant 0 : i32
    %c0_i32_1 = arith.constant 0 : i32
    return %c0_i32, %c0_i32_0 : i32, i32
  }
  func.func @transform_1(%arg0: i32) -> (i32, i32) {
    %c0_i32 = arith.constant 0 : i32
    %c0_i32_0 = arith.constant 0 : i32
    return %c0_i32, %arg0 : i32, i32
  }
  func.func @transform_2(%arg0: i32) -> (i32, i32) {
    %c0_i32 = arith.constant 0 : i32
    %c0_i32_0 = arith.constant 0 : i32
    return %c0_i32, %arg0 : i32, i32
  }
}

module attributes {stable_mosaic.version = 11 : i64} {
  func.func @_bias_tanh_kernel(%arg0: i32, %arg1: memref<3x512xf32, #tpu.memory_space<vmem>>, %arg2: memref<3x1xf32, #tpu.memory_space<vmem>>, %arg3: memref<3x512xf32, #tpu.memory_space<vmem>>) attributes {dimension_semantics = [#tpu.dimension_semantics<parallel>], iteration_bounds = array<i64: 1>, scalar_prefetch = 0 : i64, scratch_operands = 0 : i64, tpu.core_type = #tpu.core_type<tc>, window_params = [{transform_indices = @transform_0, window_bounds = array<i64: 3, 512>}, {pipeline_mode = #tpu.pipeline_mode<synchronous>, transform_indices = @transform_1, window_bounds = array<i64: 3, 1>}, {transform_indices = @transform_2, window_bounds = array<i64: 3, 512>}]} {
    %c0 = arith.constant 0 : index
    %c0_0 = arith.constant 0 : index
    %0 = vector.load %arg1[%c0, %c0_0] : memref<3x512xf32, #tpu.memory_space<vmem>>, vector<3x512xf32>
    %c0_1 = arith.constant 0 : index
    %c0_2 = arith.constant 0 : index
    %1 = vector.load %arg2[%c0_1, %c0_2] : memref<3x1xf32, #tpu.memory_space<vmem>>, vector<3x1xf32>
    %2 = vector.broadcast %1 : vector<3x1xf32> to vector<3x512xf32>
    %3 = arith.addf %0, %2 : vector<3x512xf32>
    %4 = math.tanh %3 : vector<3x512xf32>
    %c0_3 = arith.constant 0 : index
    %c0_4 = arith.constant 0 : index
    %5 = vector.load %arg3[%c0_3, %c0_4] : memref<3x512xf32, #tpu.memory_space<vmem>>, vector<3x512xf32>
    tpu.vector_store %arg3[%c0_3, %c0_4], %4 {strides = array<i32>} : memref<3x512xf32, #tpu.memory_space<vmem>>, vector<3x512xf32>,
    return
  }
  func.func @transform_0(%arg0: i32) -> (i32, i32) {
    %c0_i32 = arith.constant 0 : i32
    %c0_i32_0 = arith.constant 0 : i32
    return %c0_i32, %arg0 : i32, i32
  }
  func.func @transform_1(%arg0: i32) -> (i32, i32) {
    %c0_i32 = arith.constant 0 : i32
    %c0_i32_0 = arith.constant 0 : i32
    %c0_i32_1 = arith.constant 0 : i32
    return %c0_i32, %c0_i32_0 : i32, i32
  }
  func.func @transform_2(%arg0: i32) -> (i32, i32) {
    %c0_i32 = arith.constant 0 : i32
    %c0_i32_0 = arith.constant 0 : i32
    return %c0_i32, %arg0 : i32, i32
  }
}

</mosaic_0001>

<bundles_post_ra>
// kernel: residual_generator_forward.27
= control target key start
LH: loop header
LB: loop body
LE: loop exit
PB: predicated region body
PF: predicated region fallthrough
CT: control target
= control target key end

     0   :  { %v103_v2 = vmov 0   ;;  %s142_s0 = inlined_call_operand.vmem [shape: bf16[8,512], index: 0, kind: input, shape index: {}]   ;;  %s143_s1 = inlined_call_operand.vmem [shape: f32[8,1], index: 1, kind: input, shape index: {}]   ;;  %s144_s2 = inlined_call_operand.vmem [shape: f32[8,1], index: 2, kind: input, shape index: {}]   ;;  %s145_s3 = inlined_call_operand.vmem [shape: bf16[8,512], index: 3, kind: output, shape index: {}]  }
   0x1   :  { %v14_v0 = vld [vmem:[%s142_s0] sm:$0xff]  ;;  %v15_v1 = vld [vmem:[%s142_s0 + $0x8] sm:$0xff]  ;;  %99 = vset.pattern.permute.xlu1 %v103_v2  ;;  %100 = vset.pattern.permute.xlu0 %v103_v2 }
   0x2   :  { %v48_v3 = vld [vmem:[%s143_s1] sm:$0xff]  ;;  %v16_v4 = vunpack.c.l.bf16 %v14_v0  ;;  %v17_v5 = vunpack.c.h.bf16 %v14_v0  ;;  %v18_v6 = vunpack.c.l.bf16 %v15_v1  ;;  %v19_v7 = vunpack.c.h.bf16 %v15_v1 }
   0x3   :  { %51 = vperm.xlu1 %99, %v48_v3   ;;  %v58_v8 = vld [vmem:[%s144_s2] sm:$0xff] }
   0x4   :  { %v20_v9 = vadd.f32 %v17_v5, %v16_v4  ;;  %v25_v10 = vmul.f32 %v16_v4, %v16_v4  ;;  %v26_v11 = vmul.f32 %v17_v5, %v17_v5  ;;  %v27_v12 = vmul.f32 %v18_v6, %v18_v6 }
   0x5   :  { %v28_v14 = vmul.f32 %v19_v7, %v19_v7 }
   0x6   :  { %v21_v13 = vadd.f32 %v20_v9, %v18_v6  ;;  %v29_v15 = vadd.f32 %v26_v11, %v25_v10 }
   0x7   :  { %61 = vperm.xlu1 %99, %v58_v8  }
   0x8   :  { %v22_v16 = vadd.f32 %v21_v13, %v19_v7  ;;  %v30_v17 = vadd.f32 %v29_v15, %v27_v12 }
   0xa   :  { %23 = vadd.xlane.f32.xlu0 %v22_v16  ;;  %v31_v18 = vadd.f32 %v30_v17, %v28_v14 }
   0xe   :  { %32 = vadd.xlane.f32.xlu0 %v31_v18 }
  0x82   :  { %v52_v26 = vpop.permute.xlu1 %51 }
  0x86   :  { %v62_v40 = vpop.permute.xlu1 %61 }
  0x97   :  { %v24_v19 = vpop.xlane.xlu0 %23 }
  0x98   :  { %v34_v20 = vmul.f32 0.001953125, %v24_v19 }
  0x9a   :  { %v36_v22 = vmul.f32 %v34_v20, %v34_v20  ;;  %v38_v27 = vsub.f32 %v16_v4, %v34_v20  ;;  %v39_v28 = vsub.f32 %v17_v5, %v34_v20  ;;  %v40_v29 = vsub.f32 %v18_v6, %v34_v20 }
  0x9b   :  { %v33_v21 = vpop.xlane.xlu0 %32  ;;  %v41_v30 = vsub.f32 %v19_v7, %v34_v20 }
  0x9c   :  { %v35_v23 = vmul.f32 0.001953125, %v33_v21 }
  0x9e   :  { %v37_v24 = vsub.f32 %v35_v23, %v36_v22 }
  0xa0   :  { %v42_v25 = vadd.f32 1e-05, %v37_v24 }
  0xa2   :  { %101 = vrsqrt.f32 %v42_v25 }
  0xac   :  { %v102_v31 = vpop.eup %101 }
  0xad   :  { %v44_v32 = vmul.f32 %v102_v31, %v38_v27  ;;  %v45_v33 = vmul.f32 %v102_v31, %v39_v28  ;;  %v46_v34 = vmul.f32 %v102_v31, %v40_v29  ;;  %v47_v35 = vmul.f32 %v102_v31, %v41_v30 }
  0xaf   :  { %v54_v36 = vmul.f32 %v52_v26, %v44_v32  ;;  %v55_v37 = vmul.f32 %v52_v26, %v45_v33  ;;  %v56_v38 = vmul.f32 %v52_v26, %v46_v34  ;;  %v57_v39 = vmul.f32 %v52_v26, %v47_v35 }
  0xb1   :  { %v64_v41 = vadd.f32 %v62_v40, %v54_v36  ;;  %v65_v42 = vadd.f32 %v62_v40, %v55_v37  ;;  %v66_v43 = vadd.f32 %v62_v40, %v56_v38  ;;  %v67_v44 = vadd.f32 %v62_v40, %v57_v39 }
  0xb3   :  { %v68_v45 = vmax.f32 %v64_v41, 0.0  ;;  %v69_v46 = vmax.f32 %v65_v42, 0.0  ;;  %v70_v47 = vmax.f32 %v66_v43, 0.0  ;;  %v71_v48 = vmax.f32 %v67_v44, 0.0 }
  0xb5   :  { %v96_v49 = vpack.c.bf16 %v69_v46, %v68_v45  ;;  %v97_v50 = vpack.c.bf16 %v71_v48, %v70_v47 }
  0xb7   :  { %88 = vst [vmem:[%s145_s3] sm:$0xff] %v96_v49  ;;  %89 = vst [vmem:[%s145_s3 + $0x8] sm:$0xff] %v97_v50 }

// kernel: residual_generator_forward.26
= control target key start
LH: loop header
LB: loop body
LE: loop exit
PB: predicated region body
PF: predicated region fallthrough
CT: control target
= control target key end

     0   :  { %s891_s1 = inlined_call_operand.vmem [shape: bf16[256,512], index: 1, kind: input, shape index: {}]   ;;  %s892_s0 = inlined_call_operand.vmem [shape: bf16[8,256], index: 0, kind: input, shape index: {}]   ;;  %s893_s2 = inlined_call_operand.vmem [shape: bf16[8,512], index: 2, kind: output, shape index: {}]  }
   0x1   :  { %v577_v0 = vld [vmem:[%s891_s1 + $0x4] ss:$16 sps:$4 sm:$0xff]   ;;  %v579_v1 = vld [vmem:[%s891_s1 + $0xc] ss:$16 sps:$4 sm:$0xff]   ;;  %v581_v2 = vld [vmem:[%s891_s1] ss:$16 sps:$4 sm:$0xff]  }
   0x2   :  { %403 = vmatprep.subr.bf16.mxu0 %v577_v0  ;;  %v582_v3 = vld [vmem:[%s891_s1 + $0x8] ss:$16 sps:$4 sm:$0xff]   ;;  %444 = vmatprep.subr.bf16.mxu1 %v579_v1  ;;  %v583_v4 = vld [vmem:[%s891_s1 + $0x24] ss:$16 sps:$4 sm:$0xff]   ;;  %v585_v5 = vld [vmem:[%s891_s1 + $0x2c] ss:$16 sps:$4 sm:$0xff]  }
   0x3   :  { %404 = vmatpush1.bf16.msra.mxu0 %v581_v2  ;;  %445 = vmatpush1.bf16.msra.mxu1 %v582_v3  ;;  %v587_v6 = vld [vmem:[%s891_s1 + $0x20] ss:$16 sps:$4 sm:$0xff]   ;;  %v588_v7 = vld [vmem:[%s891_s1 + $0x28] ss:$16 sps:$4 sm:$0xff]   ;;  %v589_v8 = vld [vmem:[%s891_s1 + $0x44] ss:$16 sps:$4 sm:$0xff]  }
   0x4   :  { %405 = vmatprep.subr.bf16.mxu0 %v583_v4  ;;  %446 = vmatprep.subr.bf16.mxu1 %v585_v5  ;;  %v591_v9 = vld [vmem:[%s891_s1 + $0x4c] ss:$16 sps:$4 sm:$0xff]   ;;  %v593_v10 = vld [vmem:[%s891_s1 + $0x40] ss:$16 sps:$4 sm:$0xff]   ;;  %v594_v11 = vld [vmem:[%s891_s1 + $0x48] ss:$16 sps:$4 sm:$0xff]  }
   0x5   :  { %v595_v12 = vld [vmem:[%s891_s1 + $0x64] ss:$16 sps:$4 sm:$0xff]   ;;  %v597_v13 = vld [vmem:[%s891_s1 + $0x6c] ss:$16 sps:$4 sm:$0xff]   ;;  %v599_v14 = vld [vmem:[%s891_s1 + $0x60] ss:$16 sps:$4 sm:$0xff]  }
   0x6   :  { %v600_v15 = vld [vmem:[%s891_s1 + $0x68] ss:$16 sps:$4 sm:$0xff]   ;;  %v601_v16 = vld [vmem:[%s891_s1 + $0x84] ss:$16 sps:$4 sm:$0xff]   ;;  %v603_v17 = vld [vmem:[%s891_s1 + $0x8c] ss:$16 sps:$4 sm:$0xff]  }
   0x7   :  { %406 = vmatpush1.bf16.msra.mxu0 %v587_v6  ;;  %447 = vmatpush1.bf16.msra.mxu1 %v588_v7  ;;  %v605_v18 = vld [vmem:[%s891_s1 + $0x80] ss:$16 sps:$4 sm:$0xff]   ;;  %v606_v19 = vld [vmem:[%s891_s1 + $0x88] ss:$16 sps:$4 sm:$0xff]   ;;  %v607_v20 = vld [vmem:[%s891_s1 + $0xa4] ss:$16 sps:$4 sm:$0xff]  }
   0x8   :  { %407 = vmatprep.subr.bf16.mxu0 %v589_v8  ;;  %448 = vmatprep.subr.bf16.mxu1 %v591_v9  ;;  %v609_v21 = vld [vmem:[%s891_s1 + $0xac] ss:$16 sps:$4 sm:$0xff]   ;;  %v611_v22 = vld [vmem:[%s891_s1 + $0xa0] ss:$16 sps:$4 sm:$0xff]   ;;  %v612_v23 = vld [vmem:[%s891_s1 + $0xa8] ss:$16 sps:$4 sm:$0xff]  }
   0x9   :  { %v613_v24 = vld [vmem:[%s891_s1 + $0xc4] ss:$16 sps:$4 sm:$0xff]   ;;  %v615_v25 = vld [vmem:[%s891_s1 + $0xcc] ss:$16 sps:$4 sm:$0xff]   ;;  %v617_v26 = vld [vmem:[%s891_s1 + $0xc0] ss:$16 sps:$4 sm:$0xff]  }
   0xa   :  { %v618_v27 = vld [vmem:[%s891_s1 + $0xc8] ss:$16 sps:$4 sm:$0xff]   ;;  %v619_v28 = vld [vmem:[%s891_s1 + $0xe4] ss:$16 sps:$4 sm:$0xff]   ;;  %v621_v29 = vld [vmem:[%s891_s1 + $0xec] ss:$16 sps:$4 sm:$0xff]  }
   0xb   :  { %408 = vmatpush1.bf16.msra.mxu0 %v593_v10  ;;  %449 = vmatpush1.bf16.msra.mxu1 %v594_v11  ;;  %v623_v30 = vld [vmem:[%s891_s1 + $0xe0] ss:$16 sps:$4 sm:$0xff]   ;;  %v624_v31 = vld [vmem:[%s891_s1 + $0xe8] ss:$16 sps:$4 sm:$0xff]   ;;  %v625_v32 = vld [vmem:[%s891_s1 + $0x104] ss:$16 sps:$4 sm:$0xff]  }
   0xc   :  { %409 = vmatprep.subr.bf16.mxu0 %v595_v12  ;;  %450 = vmatprep.subr.bf16.mxu1 %v597_v13  ;;  %v627_v33 = vld [vmem:[%s891_s1 + $0x10c] ss:$16 sps:$4 sm:$0xff]   ;;  %v629_v34 = vld [vmem:[%s891_s1 + $0x100] ss:$16 sps:$4 sm:$0xff]   ;;  %v630_v35 = vld [vmem:[%s891_s1 + $0x108] ss:$16 sps:$4 sm:$0xff]  }
   0xd   :  { %v631_v36 = vld [vmem:[%s891_s1 + $0x124] ss:$16 sps:$4 sm:$0xff]   ;;  %v633_v37 = vld [vmem:[%s891_s1 + $0x12c] ss:$16 sps:$4 sm:$0xff]   ;;  %v635_v38 = vld [vmem:[%s891_s1 + $0x120] ss:$16 sps:$4 sm:$0xff]  }
   0xe   :  { %v636_v39 = vld [vmem:[%s891_s1 + $0x128] ss:$16 sps:$4 sm:$0xff]   ;;  %v637_v40 = vld [vmem:[%s891_s1 + $0x144] ss:$16 sps:$4 sm:$0xff]   ;;  %v639_v41 = vld [vmem:[%s891_s1 + $0x14c] ss:$16 sps:$4 sm:$0xff]  }
   0xf   :  { %410 = vmatpush1.bf16.msra.mxu0 %v599_v14  ;;  %451 = vmatpush1.bf16.msra.mxu1 %v600_v15  ;;  %v641_v42 = vld [vmem:[%s891_s1 + $0x140] ss:$16 sps:$4 sm:$0xff]   ;;  %v642_v43 = vld [vmem:[%s891_s1 + $0x148] ss:$16 sps:$4 sm:$0xff]   ;;  %v643_v44 = vld [vmem:[%s891_s1 + $0x164] ss:$16 sps:$4 sm:$0xff]  }
  0x10   :  { %411 = vmatprep.subr.bf16.mxu0 %v601_v16  ;;  %452 = vmatprep.subr.bf16.mxu1 %v603_v17  ;;  %v645_v45 = vld [vmem:[%s891_s1 + $0x16c] ss:$16 sps:$4 sm:$0xff]   ;;  %v11_v46 = vld [vmem:[%s892_s0] sm:$0xff]  ;;  %v648_v49 = vld [vmem:[%s891_s1 + $0x168] ss:$16 sps:$4 sm:$0xff]  }
  0x11   :  { %v508_v47 = vcombine.high %v11_v46, %v11_v46  ;;  %v647_v48 = vld [vmem:[%s891_s1 + $0x160] ss:$16 sps:$4 sm:$0xff]   ;;  %v649_v50 = vld [vmem:[%s891_s1 + $0x184] ss:$16 sps:$4 sm:$0xff]   ;;  %v651_v51 = vld [vmem:[%s891_s1 + $0x18c] ss:$16 sps:$4 sm:$0xff]   ;;  %v507_v2 = vcombine.low %v11_v46, %v11_v46 }
  0x12   :  { %v653_v52 = vld [vmem:[%s891_s1 + $0x180] ss:$16 sps:$4 sm:$0xff]   ;;  %v654_v53 = vld [vmem:[%s891_s1 + $0x188] ss:$16 sps:$4 sm:$0xff]   ;;  %v655_v54 = vld [vmem:[%s891_s1 + $0x1a4] ss:$16 sps:$4 sm:$0xff]  }
  0x13   :  { %412 = vmatpush1.bf16.msra.mxu0 %v605_v18  ;;  %453 = vmatpush1.bf16.msra.mxu1 %v606_v19  ;;  %v657_v55 = vld [vmem:[%s891_s1 + $0x1ac] ss:$16 sps:$4 sm:$0xff]   ;;  %v659_v56 = vld [vmem:[%s891_s1 + $0x1a0] ss:$16 sps:$4 sm:$0xff]   ;;  %v660_v57 = vld [vmem:[%s891_s1 + $0x1a8] ss:$16 sps:$4 sm:$0xff]  }
  0x14   :  { %413 = vmatprep.subr.bf16.mxu0 %v607_v20  ;;  %454 = vmatprep.subr.bf16.mxu1 %v609_v21  ;;  %v661_v58 = vld [vmem:[%s891_s1 + $0x1c4] ss:$16 sps:$4 sm:$0xff]   ;;  %v663_v59 = vld [vmem:[%s891_s1 + $0x1cc] ss:$16 sps:$4 sm:$0xff]   ;;  %v665_v60 = vld [vmem:[%s891_s1 + $0x1c0] ss:$16 sps:$4 sm:$0xff]  }
  0x15   :  { %435 = vmatprep.mubr.bf16.mxu0 %v508_v47  ;;  %476 = vmatprep.mubr.bf16.mxu1 %v508_v47  ;;  %v666_v61 = vld [vmem:[%s891_s1 + $0x1c8] ss:$16 sps:$4 sm:$0xff]   ;;  %v667_v62 = vld [vmem:[%s891_s1 + $0x1e4] ss:$16 sps:$4 sm:$0xff]   ;;  %v669_v63 = vld [vmem:[%s891_s1 + $0x1ec] ss:$16 sps:$4 sm:$0xff]  }
  0x16   :  { %v671_v0 = vld [vmem:[%s891_s1 + $0x1e0] ss:$16 sps:$4 sm:$0xff]   ;;  %v672_v1 = vld [vmem:[%s891_s1 + $0x1e8] ss:$16 sps:$4 sm:$0xff]  }
  0x17   :  { %414 = vmatpush1.bf16.msra.mxu0 %v611_v22  ;;  %455 = vmatpush1.bf16.msra.mxu1 %v612_v23 }
  0x18   :  { %415 = vmatprep.subr.bf16.mxu0 %v613_v24  ;;  %456 = vmatprep.subr.bf16.mxu1 %v615_v25 }
  0x1b   :  { %416 = vmatpush1.bf16.msra.mxu0 %v617_v26  ;;  %457 = vmatpush1.bf16.msra.mxu1 %v618_v27 }
  0x1c   :  { %417 = vmatprep.subr.bf16.mxu0 %v619_v28  ;;  %458 = vmatprep.subr.bf16.mxu1 %v621_v29 }
  0x1f   :  { %418 = vmatpush1.bf16.msra.mxu0 %v623_v30  ;;  %459 = vmatpush1.bf16.msra.mxu1 %v624_v31 }
  0x20   :  { %419 = vmatprep.subr.bf16.mxu0 %v625_v32  ;;  %460 = vmatprep.subr.bf16.mxu1 %v627_v33 }
  0x23   :  { %420 = vmatpush1.bf16.msra.mxu0 %v629_v34  ;;  %461 = vmatpush1.bf16.msra.mxu1 %v630_v35 }
  0x24   :  { %421 = vmatprep.subr.bf16.mxu0 %v631_v36  ;;  %462 = vmatprep.subr.bf16.mxu1 %v633_v37 }
  0x27   :  { %422 = vmatpush1.bf16.msra.mxu0 %v635_v38  ;;  %463 = vmatpush1.bf16.msra.mxu1 %v636_v39 }
  0x28   :  { %423 = vmatprep.subr.bf16.mxu0 %v637_v40  ;;  %464 = vmatprep.subr.bf16.mxu1 %v639_v41 }
  0x2b   :  { %424 = vmatpush1.bf16.msra.mxu0 %v641_v42  ;;  %465 = vmatpush1.bf16.msra.mxu1 %v642_v43 }
  0x2c   :  { %425 = vmatprep.subr.bf16.mxu0 %v643_v44  ;;  %466 = vmatprep.subr.bf16.mxu1 %v645_v45 }
  0x2f   :  { %426 = vmatpush1.bf16.msra.mxu0 %v647_v48  ;;  %467 = vmatpush1.bf16.msra.mxu1 %v648_v49 }
  0x30   :  { %427 = vmatprep.subr.bf16.mxu0 %v649_v50  ;;  %468 = vmatprep.subr.bf16.mxu1 %v651_v51 }
  0x33   :  { %428 = vmatpush1.bf16.msra.mxu0 %v653_v52  ;;  %469 = vmatpush1.bf16.msra.mxu1 %v654_v53 }
  0x34   :  { %429 = vmatprep.subr.bf16.mxu0 %v655_v54  ;;  %470 = vmatprep.subr.bf16.mxu1 %v657_v55 }
  0x37   :  { %430 = vmatpush1.bf16.msra.mxu0 %v659_v56  ;;  %471 = vmatpush1.bf16.msra.mxu1 %v660_v57 }
  0x38   :  { %431 = vmatprep.subr.bf16.mxu0 %v661_v58  ;;  %472 = vmatprep.subr.bf16.mxu1 %v663_v59 }
  0x3b   :  { %432 = vmatpush1.bf16.msra.mxu0 %v665_v60  ;;  %473 = vmatpush1.bf16.msra.mxu1 %v666_v61 }
  0x3c   :  { %433 = vmatprep.subr.bf16.mxu0 %v667_v62  ;;  %474 = vmatprep.subr.bf16.mxu1 %v669_v63 }
  0x3f   :  { %434 = vmatpush1.bf16.msra.mxu0 %v671_v0  ;;  %475 = vmatpush1.bf16.msra.mxu1 %v672_v1 }
  0x42   :  { %436 = vmatmul.mubr.bf16.vlgmr.msra.gmra.mrb[0].mxu0 %v507_v2  ;;  %477 = vmatmul.mubr.bf16.vlgmr.msra.gmra.mrb[0].mxu1 %v507_v2 }
 0x115   :  { %v437_v3 = vpop.f32.mrb[0].mxu0  ;;  %v478_v4 = vpop.f32.mrb[0].mxu1 }
 0x116   :  { %v439_v5 = vpop.f32.mrb[1].mxu0  ;;  %v480_v6 = vpop.f32.mrb[1].mxu1 }
 0x117   :  { %v575_v7 = vpack.c.bf16 %v439_v5, %v437_v3  ;;  %v576_v8 = vpack.c.bf16 %v480_v6, %v478_v4  ;;  %v441_v9 = vpop.f32.mrb[2].mxu0  ;;  %v482_v10 = vpop.f32.mrb[2].mxu1 }
 0x118   :  { %v442_v11 = vpop.f32.mrb[3].mxu0  ;;  %v483_v12 = vpop.f32.mrb[3].mxu1 }
 0x119   :  { %501 = vst [vmem:[%s893_s2] sm:$0xff] %v575_v7  ;;  %502 = vst [vmem:[%s893_s2 + $0x8] sm:$0xff] %v576_v8 }

// kernel: residual_generator_forward.28
= control target key start
LH: loop header
LB: loop body
LE: loop exit
PB: predicated region body
PF: predicated region fallthrough
CT: control target
= control target key end

     0   :  { %v197_v0 = vmov 0.0   ;;  %vm198_vm0 = vmmov 0   ;;  %s244_s1 = inlined_call_operand.vmem [shape: bf16[128,128], index: 1, kind: input, shape index: {}]   ;;  %s245_s0 = inlined_call_operand.vmem [shape: bf16[16,128], index: 0, kind: input, shape index: {}]   ;;  %s246_s2 = inlined_call_operand.vmem [shape: bf16[16,128], index: 2, kind: output, shape index: {}]  }
   0x1   :  { %166 = vmatprep.subr.bf16.mxu0 %v197_v0  ;;  %v188_v1 = vld [vmem:[%s244_s1] sm:$0xff]   ;;  %182 = vmatprep.mubr.msk.bf16.mxu0 %vm198_vm0, %v197_v0  ;;  %v189_v2 = vld [vmem:[%s244_s1 + $0x8] sm:$0xff]   ;;  %v190_v3 = vld [vmem:[%s244_s1 + $0x10] sm:$0xff]  }
   0x2   :  { %167 = vmatpush3.bf16.msra.mxu0 %v188_v1  ;;  %v191_v4 = vld [vmem:[%s244_s1 + $0x18] sm:$0xff]   ;;  %v192_v5 = vld [vmem:[%s244_s1 + $0x20] sm:$0xff]   ;;  %v193_v6 = vld [vmem:[%s244_s1 + $0x28] sm:$0xff]  }
   0x3   :  { %168 = vmatprep.subr.bf16.mxu0 %v197_v0  ;;  %v194_v7 = vld [vmem:[%s244_s1 + $0x30] sm:$0xff]   ;;  %v195_v8 = vld [vmem:[%s244_s1 + $0x38] sm:$0xff]   ;;  %v196_v9 = vld [vmem:[%s245_s0] sm:$0xff]  }
   0x6   :  { %169 = vmatpush3.bf16.msra.mxu0 %v189_v2 }
   0x7   :  { %170 = vmatprep.subr.bf16.mxu0 %v197_v0 }
   0xa   :  { %171 = vmatpush3.bf16.msra.mxu0 %v190_v3 }
   0xb   :  { %172 = vmatprep.subr.bf16.mxu0 %v197_v0 }
   0xe   :  { %173 = vmatpush3.bf16.msra.mxu0 %v191_v4 }
   0xf   :  { %174 = vmatprep.subr.bf16.mxu0 %v197_v0 }
  0x12   :  { %175 = vmatpush3.bf16.msra.mxu0 %v192_v5 }
  0x13   :  { %176 = vmatprep.subr.bf16.mxu0 %v197_v0 }
  0x16   :  { %177 = vmatpush3.bf16.msra.mxu0 %v193_v6 }
  0x17   :  { %178 = vmatprep.subr.bf16.mxu0 %v197_v0 }
  0x1a   :  { %179 = vmatpush3.bf16.msra.mxu0 %v194_v7 }
  0x1b   :  { %180 = vmatprep.subr.bf16.mxu0 %v197_v0 }
  0x1e   :  { %181 = vmatpush3.bf16.msra.mxu0 %v195_v8 }
  0x21   :  { %183 = vmatmul.mubr.bf16.vlgmr.msra.gmra.mrb[0].mxu0 %v196_v9 }
  0xf4   :  { %v118_v10 = vpop.f32.mrb[0].mxu0 }
  0xf5   :  { %v184_v11 = vpop.f32.mrb[1].mxu0 }
  0xf6   :  { %v121_v12 = vpop.f32.mrb[2].mxu0 }
  0xf7   :  { %v155_v13 = vpack.c.bf16 %v121_v12, %v118_v10  ;;  %v185_v14 = vpop.f32.mrb[3].mxu0 }
  0xf9   :  { %156 = vst [vmem:[%s246_s2] sm:$0xff] %v155_v13  }

// kernel: residual_generator_forward.29
= control target key start
LH: loop header
LB: loop body
LE: loop exit
PB: predicated region body
PF: predicated region fallthrough
CT: control target
= control target key end

     0   :  { %v108_v1 = vmov 0   ;;  %s147_s0 = inlined_call_operand.vmem [shape: bf16[16,128], index: 0, kind: input, shape index: {}]   ;;  %s148_s1 = inlined_call_operand.vmem [shape: f32[16,1], index: 1, kind: input, shape index: {}]   ;;  %s149_s2 = inlined_call_operand.vmem [shape: f32[16,1], index: 2, kind: input, shape index: {}]   ;;  %s150_s3 = inlined_call_operand.vmem [shape: bf16[16,128], index: 3, kind: output, shape index: {}]  }
   0x1   :  { %v93_v0 = vld [vmem:[%s147_s0] sm:$0xff]   ;;  %103 = vset.pattern.permute.xlu1 %v108_v1  ;;  %102 = vset.pattern.permute.xlu0 %v108_v1  ;;  %v45_v6 = vld [vmem:[%s148_s1 + $0x8] sm:$0xff] }
   0x2   :  { %v94_v2 = vunpack.c.l.bf16 %v93_v0  ;;  %v95_v3 = vunpack.c.h.bf16 %v93_v0  ;;  %v44_v7 = vld [vmem:[%s148_s1] sm:$0xff]  ;;  %v59_v9 = vld [vmem:[%s149_s2 + $0x8] sm:$0xff] }
   0x3   :  { %v58_v8 = vld [vmem:[%s149_s2] sm:$0xff] }
   0x4   :  { %18 = vadd.xlane.f32.xlu0 %v94_v2  ;;  %v22_v4 = vmul.f32 %v94_v2, %v94_v2  ;;  %v23_v5 = vmul.f32 %v95_v3, %v95_v3 }
   0x6   :  { %24 = vadd.xlane.f32.xlu1 %v22_v4 }
   0x8   :  { %20 = vadd.xlane.f32.xlu0 %v95_v3 }
   0xa   :  { %26 = vadd.xlane.f32.xlu1 %v23_v5 }
  0x1b   :  { %53 = vperm.xlu1 %103, %v45_v6  }
  0x1e   :  { %48 = vperm.xlu0 %102, %v44_v7  }
  0x1f   :  { %62 = vperm.xlu1 %103, %v58_v8  }
  0x23   :  { %67 = vperm.xlu1 %103, %v59_v9  }
  0x91   :  { %v19_v10 = vpop.xlane.xlu0 %18 }
  0x92   :  { %v28_v11 = vmul.f32 0.0078125, %v19_v10 }
  0x93   :  { %v25_v12 = vpop.xlane.xlu1 %24 }
  0x94   :  { %v32_v13 = vmul.f32 %v28_v11, %v28_v11  ;;  %v30_v14 = vmul.f32 0.0078125, %v25_v12  ;;  %v36_v25 = vsub.f32 %v94_v2, %v28_v11 }
  0x95   :  { %v21_v15 = vpop.xlane.xlu0 %20 }
  0x96   :  { %v34_v16 = vsub.f32 %v30_v14, %v32_v13  ;;  %v29_v17 = vmul.f32 0.0078125, %v21_v15 }
  0x97   :  { %v27_v18 = vpop.xlane.xlu1 %26 }
  0x98   :  { %v38_v19 = vadd.f32 1e-05, %v34_v16  ;;  %v33_v20 = vmul.f32 %v29_v17, %v29_v17  ;;  %v31_v21 = vmul.f32 0.0078125, %v27_v18  ;;  %v37_v30 = vsub.f32 %v95_v3, %v29_v17 }
  0x9a   :  { %104 = vrsqrt.f32 %v38_v19  ;;  %v35_v22 = vsub.f32 %v31_v21, %v33_v20 }
  0x9b   :  { %v54_v24 = vpop.permute.xlu1 %53 }
  0x9c   :  { %v39_v23 = vadd.f32 1e-05, %v35_v22 }
  0x9d   :  { %v49_v27 = vpop.permute.xlu0 %48 }
  0x9e   :  { %106 = vrsqrt.f32 %v39_v23 }
  0x9f   :  { %v63_v29 = vpop.permute.xlu1 %62 }
  0xa3   :  { %v68_v36 = vpop.permute.xlu1 %67 }
  0xa4   :  { %v105_v26 = vpop.eup %104 }
  0xa5   :  { %v42_v28 = vmul.f32 %v105_v26, %v36_v25 }
  0xa7   :  { %v56_v31 = vmul.f32 %v49_v27, %v42_v28 }
  0xa8   :  { %v107_v32 = vpop.eup %106 }
  0xa9   :  { %v43_v33 = vmul.f32 %v107_v32, %v37_v30  ;;  %v70_v35 = vadd.f32 %v63_v29, %v56_v31 }
  0xab   :  { %v57_v34 = vmul.f32 %v54_v24, %v43_v33  ;;  %v72_v39 = vmax.f32 %v70_v35, 0.0 }
  0xad   :  { %v71_v37 = vadd.f32 %v68_v36, %v57_v34 }
  0xaf   :  { %v73_v38 = vmax.f32 %v71_v37, 0.0 }
  0xb1   :  { %v99_v40 = vpack.c.bf16 %v73_v38, %v72_v39 }
  0xb3   :  { %100 = vst [vmem:[%s150_s3] sm:$0xff] %v99_v40  }

// kernel: residual_generator_forward.30
= control target key start
LH: loop header
LB: loop body
LE: loop exit
PB: predicated region body
PF: predicated region fallthrough
CT: control target
= control target key end

     0   :  { %s423_s1 = inlined_call_operand.vmem [shape: bf16[256,128], index: 1, kind: input, shape index: {}]   ;;  %s424_s0 = inlined_call_operand.vmem [shape: bf16[32,256], index: 0, kind: input, shape index: {}]   ;;  %s425_s2 = inlined_call_operand.vmem [shape: bf16[32,128], index: 2, kind: output, shape index: {}]  }
   0x1   :  { %v320_v0 = vld [vmem:[%s423_s1 + $0x40] sm:$0xff]   ;;  %v322_v2 = vld [vmem:[%s423_s1 + $0x48] sm:$0xff]   ;;  %v324_v4 = vld [vmem:[%s423_s1 + $0x50] sm:$0xff]  }
   0x2   :  { %v321_v1 = vld [vmem:[%s423_s1] sm:$0xff]   ;;  %276 = vmatprep.subr.bf16.mxu0 %v320_v0  ;;  %304 = vmatprep.subr.bf16.mxu1 %v320_v0  ;;  %v323_v3 = vld [vmem:[%s423_s1 + $0x8] sm:$0xff]   ;;  %v325_v5 = vld [vmem:[%s423_s1 + $0x10] sm:$0xff]  }
   0x3   :  { %277 = vmatpush3.bf16.msra.mxu0 %v321_v1  ;;  %312 = vmatpush3.bf16.msra.mxu1 %v321_v1  ;;  %v326_v6 = vld [vmem:[%s423_s1 + $0x58] sm:$0xff]   ;;  %v328_v8 = vld [vmem:[%s423_s1 + $0x60] sm:$0xff]   ;;  %v330_v10 = vld [vmem:[%s423_s1 + $0x68] sm:$0xff]  }
   0x4   :  { %278 = vmatprep.subr.bf16.mxu0 %v322_v2  ;;  %305 = vmatprep.subr.bf16.mxu1 %v322_v2  ;;  %v327_v7 = vld [vmem:[%s423_s1 + $0x18] sm:$0xff]   ;;  %v329_v9 = vld [vmem:[%s423_s1 + $0x20] sm:$0xff]   ;;  %v331_v13 = vld [vmem:[%s423_s1 + $0x28] sm:$0xff]  }
   0x5   :  { %v338_v11 = vld [vmem:[%s424_s0 + $0x4] ss:$8 sps:$4 sm:$0xff]   ;;  %v341_v12 = vld [vmem:[%s424_s0 + $0x14] ss:$8 sps:$4 sm:$0xff]   ;;  %v336_v18 = vld [vmem:[%s424_s0] ss:$8 sps:$4 sm:$0xff]  }
   0x6   :  { %v332_v14 = vld [vmem:[%s423_s1 + $0x70] sm:$0xff]   ;;  %196 = vmatprep.mubr.bf16.mxu0 %v338_v11  ;;  %204 = vmatprep.mubr.bf16.mxu1 %v341_v12  ;;  %v334_v16 = vld [vmem:[%s423_s1 + $0x78] sm:$0xff]  }
   0x7   :  { %279 = vmatpush3.bf16.msra.mxu0 %v323_v3  ;;  %313 = vmatpush3.bf16.msra.mxu1 %v323_v3  ;;  %v333_v15 = vld [vmem:[%s423_s1 + $0x30] sm:$0xff]   ;;  %v335_v17 = vld [vmem:[%s423_s1 + $0x38] sm:$0xff]  }
   0x8   :  { %280 = vmatprep.subr.bf16.mxu0 %v324_v4  ;;  %306 = vmatprep.subr.bf16.mxu1 %v324_v4  ;;  %v339_v19 = vld [vmem:[%s424_s0 + $0x10] ss:$8 sps:$4 sm:$0xff]  }
   0xb   :  { %281 = vmatpush3.bf16.msra.mxu0 %v325_v5  ;;  %314 = vmatpush3.bf16.msra.mxu1 %v325_v5 }
   0xc   :  { %282 = vmatprep.subr.bf16.mxu0 %v326_v6  ;;  %307 = vmatprep.subr.bf16.mxu1 %v326_v6 }
   0xf   :  { %283 = vmatpush3.bf16.msra.mxu0 %v327_v7  ;;  %315 = vmatpush3.bf16.msra.mxu1 %v327_v7 }
  0x10   :  { %284 = vmatprep.subr.bf16.mxu0 %v328_v8  ;;  %308 = vmatprep.subr.bf16.mxu1 %v328_v8 }
  0x13   :  { %285 = vmatpush3.bf16.msra.mxu0 %v329_v9  ;;  %316 = vmatpush3.bf16.msra.mxu1 %v329_v9 }
  0x14   :  { %286 = vmatprep.subr.bf16.mxu0 %v330_v10  ;;  %309 = vmatprep.subr.bf16.mxu1 %v330_v10 }
  0x17   :  { %287 = vmatpush3.bf16.msra.mxu0 %v331_v13  ;;  %317 = vmatpush3.bf16.msra.mxu1 %v331_v13 }
  0x18   :  { %288 = vmatprep.subr.bf16.mxu0 %v332_v14  ;;  %310 = vmatprep.subr.bf16.mxu1 %v332_v14 }
  0x1b   :  { %289 = vmatpush3.bf16.msra.mxu0 %v333_v15  ;;  %318 = vmatpush3.bf16.msra.mxu1 %v333_v15 }
  0x1c   :  { %290 = vmatprep.subr.bf16.mxu0 %v334_v16  ;;  %311 = vmatprep.subr.bf16.mxu1 %v334_v16 }
  0x1f   :  { %291 = vmatpush3.bf16.msra.mxu0 %v335_v17  ;;  %319 = vmatpush3.bf16.msra.mxu1 %v335_v17 }
  0x22   :  { %197 = vmatmul.mubr.bf16.vlgmr.msra.gmra.mrb[0].mxu0 %v336_v18  ;;  %205 = vmatmul.mubr.bf16.vlgmr.msra.gmra.mrb[0].mxu1 %v339_v19 }
  0xf5   :  { %v292_v20 = vpop.f32.mrb[0].mxu0  ;;  %v298_v21 = vpop.f32.mrb[0].mxu1 }
  0xf6   :  { %v293_v22 = vpop.f32.mrb[1].mxu0  ;;  %v299_v23 = vpop.f32.mrb[1].mxu1 }
  0xf7   :  { %v294_v24 = vadd.f32 %v293_v22, %v292_v20  ;;  %v300_v25 = vadd.f32 %v299_v23, %v298_v21  ;;  %v295_v26 = vpop.f32.mrb[2].mxu0  ;;  %v301_v27 = vpop.f32.mrb[2].mxu1 }
  0xf8   :  { %v296_v28 = vpop.f32.mrb[3].mxu0  ;;  %v302_v29 = vpop.f32.mrb[3].mxu1 }
  0xf9   :  { %v297_v30 = vadd.f32 %v296_v28, %v295_v26  ;;  %v303_v31 = vadd.f32 %v302_v29, %v301_v27 }
  0xfb   :  { %v268_v32 = vpack.c.bf16 %v297_v30, %v294_v24  ;;  %v273_v33 = vpack.c.bf16 %v303_v31, %v300_v25 }
  0xfd   :  { %269 = vst [vmem:[%s425_s2] sm:$0xff] %v268_v32   ;;  %275 = vst [vmem:[%s425_s2 + $0x8] sm:$0xff] %v273_v33  }

// kernel: residual_generator_forward.31
= control target key start
LH: loop header
LB: loop body
LE: loop exit
PB: predicated region body
PF: predicated region fallthrough
CT: control target
= control target key end

     0   :  { %s441_s12 = smov 0   ;;  %s472_s0 = inlined_call_operand.vmem [shape: bf16[32,32], index: 0, kind: input, shape index: {}]   ;;  %s473_s1 = inlined_call_operand.vmem [shape: f32[32,1], index: 1, kind: input, shape index: {}]   ;;  %s474_s2 = inlined_call_operand.vmem [shape: f32[32,1], index: 2, kind: input, shape index: {}]   ;;  %s475_s3 = inlined_call_operand.vmem [shape: bf16[32,32], index: 3, kind: output, shape index: {}]  }
   0x1 LB: > { %s374_s13 = sadd.s32 4294967295, %s418_s12   ;;  %p378_p0 = scmp.ge.s32.totalorder %s418_s12, 1  ;;  %s418_s12 = sphi %s441_s12, %s13_s12  }
   0x2   : > { %p160_p1 = scmp.lt.s32.totalorder %s418_s12, 3 }
   0x4   : > { %p161_p2 = pnand %p378_p0, %p160_p1 }
   0x5   : > { %s379_s14 = sshll.u32 (!%p161_p2), %s374_s13, 1  ;;  %v420_v0 = vmov (!%p161_p2), 0   ;;  %vm222_vm0 = vcmask (!%p161_p2), 261120   ;;  %vm291_vm1 = vcmask (!%p161_p2), 257024  }
   0x6   : > { %164 = sbr.rel (%p161_p2) target bundleno = 196 (0xc4), region = 32  ;;  %p195_p3 = scmp.lt.s32.totalorder (!%p161_p2), %s379_s14, 3  ;;  %407 = vset.pattern.permute.xlu1 (!%p161_p2), %v420_v0  ;;  %406 = vset.pattern.permute.xlu0 (!%p161_p2), %v420_v0 }
   0xd   : > { %s477_s14 = smov (!%p195_p3, %s379_s14), 3 }
   0xe   : > { %s380_s15 = sshll.u32 %s477_s14, 2  ;;  %s382_s19 = sshll.u32 %s477_s14, 3 }
   0xf   : > { %s198_s18 = scalar_lea.vmem %s472_s0, %s380_s15  ;;  %s204_s22 = scalar_lea.vmem %s473_s1, %s382_s19 }
  0x10   : > { %v394_v1 = vld [vmem:[%s198_s18] sm:$0xff]   ;;  %v254_v10 = vld [vmem:[%s204_s22 + $0x8] sm:$0xff]  ;;  %s210_s25 = scalar_lea.vmem %s474_s2, %s382_s19  ;;  %s216_s28 = scalar_lea.vmem %s475_s3, %s380_s15 }
  0x11   : > { %v395_v2 = vunpack.c.l.bf16 %v394_v1  ;;  %v396_v3 = vunpack.c.h.bf16 %v394_v1  ;;  %v253_v11 = vld [vmem:[%s204_s22] sm:$0xff]  ;;  %v268_v13 = vld [vmem:[%s210_s25 + $0x8] sm:$0xff] }
  0x12   : > { %v267_v12 = vld [vmem:[%s210_s25] sm:$0xff] }
  0x13   : > { %v223_v4 = vsel %vm222_vm0, %v395_v2, 0.0  ;;  %v229_v5 = vmul.f32 %v395_v2, %v395_v2  ;;  %v230_v6 = vmul.f32 %v396_v3, %v396_v3  ;;  %v226_v8 = vsel %vm222_vm0, %v396_v3, 0.0 }
  0x14   : > { %224 = vadd.xlane.f32.xlu0 %v223_v4 }
  0x15   : > { %v231_v7 = vsel %vm222_vm0, %v229_v5, 0.0  ;;  %v234_v9 = vsel %vm222_vm0, %v230_v6, 0.0 }
  0x16   : > { %232 = vadd.xlane.f32.xlu1 %v231_v7 }
  0x18   : > { %227 = vadd.xlane.f32.xlu0 %v226_v8 }
  0x1a   : > { %235 = vadd.xlane.f32.xlu1 %v234_v9 }
  0x2b   : > { %262 = vperm.xlu1 %407, %v254_v10  }
  0x2e   : > { %257 = vperm.xlu0 %406, %v253_v11  }
  0x2f   : > { %271 = vperm.xlu1 %407, %v267_v12  }
  0x33   : > { %276 = vperm.xlu1 %407, %v268_v13  }
  0xa1   : > { %v225_v14 = vpop.xlane.xlu0 %224 }
  0xa2   : > { %v237_v15 = vmul.f32 0.03125, %v225_v14 }
  0xa3   : > { %v233_v16 = vpop.xlane.xlu1 %232 }
  0xa4   : > { %v241_v17 = vmul.f32 %v237_v15, %v237_v15  ;;  %v239_v18 = vmul.f32 0.03125, %v233_v16  ;;  %v245_v29 = vsub.f32 %v395_v2, %v237_v15 }
  0xa5   : > { %v228_v19 = vpop.xlane.xlu0 %227 }
  0xa6   : > { %v243_v20 = vsub.f32 %v239_v18, %v241_v17  ;;  %v238_v21 = vmul.f32 0.03125, %v228_v19 }
  0xa7   : > { %v236_v22 = vpop.xlane.xlu1 %235 }
  0xa8   : > { %v247_v23 = vadd.f32 1e-05, %v243_v20  ;;  %v242_v24 = vmul.f32 %v238_v21, %v238_v21  ;;  %v240_v25 = vmul.f32 0.03125, %v236_v22  ;;  %v246_v34 = vsub.f32 %v396_v3, %v238_v21 }
  0xaa   : > { %408 = vrsqrt.f32 %v247_v23  ;;  %v244_v26 = vsub.f32 %v240_v25, %v242_v24 }
  0xab   : > { %v263_v28 = vpop.permute.xlu1 %262 }
  0xac   : > { %v248_v27 = vadd.f32 1e-05, %v244_v26 }
  0xad   : > { %v258_v31 = vpop.permute.xlu0 %257 }
  0xae   : > { %410 = vrsqrt.f32 %v248_v27 }
  0xaf   : > { %v272_v33 = vpop.permute.xlu1 %271 }
  0xb3   : > { %v277_v41 = vpop.permute.xlu1 %276 }
  0xb4   : > { %v409_v30 = vpop.eup %408 }
  0xb5   : > { %v251_v32 = vmul.f32 %v409_v30, %v245_v29 }
  0xb7   : > { %v265_v35 = vmul.f32 %v258_v31, %v251_v32 }
  0xb8   : > { %v411_v36 = vpop.eup %410 }
  0xb9   : > { %v252_v37 = vmul.f32 %v411_v36, %v246_v34  ;;  %v279_v38 = vadd.f32 %v272_v33, %v265_v35 }
  0xbb   : > { %v266_v39 = vmul.f32 %v263_v28, %v252_v37  ;;  %v281_v40 = vmax.f32 %v279_v38, 0.0 }
  0xbd   : > { %v280_v42 = vadd.f32 %v277_v41, %v266_v39  ;;  %v391_v43 = vpack.c.bf16 %v281_v40, %v281_v40 }
  0xbf   : > { %v282_v44 = vmax.f32 %v280_v42, 0.0  ;;  %292 = vst.msk [vmem:[%s216_s28] sm:$0xf] %vm291_vm1, %v391_v43 }
  0xc1   : > { %v392_v45 = vpack.c.bf16 %v282_v44, %v282_v44 }
  0xc3   : > { %293 = vst.msk [vmem:[%s216_s28 + $0x4] sm:$0xf] %vm291_vm1, %v392_v45 }
  0xc4 PF: > { %s13_s12 = sadd.s32 1, %s418_s12  }
  0xc5   : > { %p10_p4 = scmp.ge.s32.totalorder %s13_s12, 4  }
  0xc7   :  { %12 = sbr.rel (!%p10_p4) target bundleno = 1 (0x1), region = 68 }

// kernel: residual_generator_forward.32
= control target key start
LH: loop header
LB: loop body
LE: loop exit
PB: predicated region body
PF: predicated region fallthrough
CT: control target
= control target key end

     0   :  { %s616_s1 = inlined_call_operand.vmem [shape: bf16[384,128], index: 1, kind: input, shape index: {}]   ;;  %s617_s0 = inlined_call_operand.vmem [shape: bf16[32,384], index: 0, kind: input, shape index: {}]   ;;  %s618_s2 = inlined_call_operand.vmem [shape: bf16[32,128], index: 2, kind: output, shape index: {}]  }
   0x1   :  { %v473_v0 = vld [vmem:[%s616_s1 + $0x40] sm:$0xff]   ;;  %v476_v3 = vld [vmem:[%s616_s1 + $0x48] sm:$0xff]   ;;  %v479_v6 = vld [vmem:[%s616_s1 + $0x50] sm:$0xff]  }
   0x2   :  { %v474_v1 = vld [vmem:[%s616_s1] sm:$0xff]   ;;  %415 = vmatprep.subr.bf16.mxu0 %v473_v0  ;;  %v477_v4 = vld [vmem:[%s616_s1 + $0x8] sm:$0xff]   ;;  %v480_v7 = vld [vmem:[%s616_s1 + $0x10] sm:$0xff]  }
   0x3   :  { %v475_v2 = vld [vmem:[%s616_s1 + $0x80] sm:$0xff]   ;;  %416 = vmatpush3.bf16.msra.mxu0 %v474_v1  ;;  %v478_v5 = vld [vmem:[%s616_s1 + $0x88] sm:$0xff]   ;;  %v481_v8 = vld [vmem:[%s616_s1 + $0x90] sm:$0xff]  }
   0x4   :  { %453 = vmatprep.subr.bf16.mxu1 %v475_v2  ;;  %417 = vmatprep.subr.bf16.mxu0 %v476_v3  ;;  %v482_v9 = vld [vmem:[%s616_s1 + $0x58] sm:$0xff]   ;;  %v485_v12 = vld [vmem:[%s616_s1 + $0x60] sm:$0xff]   ;;  %v488_v15 = vld [vmem:[%s616_s1 + $0x68] sm:$0xff]  }
   0x5   :  { %454 = vmatpush3.bf16.msra.mxu1 %v475_v2  ;;  %v483_v10 = vld [vmem:[%s616_s1 + $0x18] sm:$0xff]   ;;  %v487_v13 = vld [vmem:[%s616_s1 + $0xa0] sm:$0xff]   ;;  %v490_v16 = vld [vmem:[%s616_s1 + $0xa8] sm:$0xff]  }
   0x6   :  { %455 = vmatprep.subr.bf16.mxu1 %v478_v5  ;;  %v484_v11 = vld [vmem:[%s616_s1 + $0x98] sm:$0xff]   ;;  %v486_v14 = vld [vmem:[%s616_s1 + $0x20] sm:$0xff]   ;;  %v489_v17 = vld [vmem:[%s616_s1 + $0x28] sm:$0xff]  }
   0x7   :  { %418 = vmatpush3.bf16.msra.mxu0 %v477_v4  ;;  %v491_v18 = vld [vmem:[%s616_s1 + $0x70] sm:$0xff]   ;;  %v494_v21 = vld [vmem:[%s616_s1 + $0x78] sm:$0xff]   ;;  %v497_v26 = vld [vmem:[%s617_s0] ss:$12 sps:$4 sm:$0xff]  }
   0x8   :  { %419 = vmatprep.subr.bf16.mxu0 %v479_v6  ;;  %v492_v19 = vld [vmem:[%s616_s1 + $0x30] sm:$0xff]   ;;  %v496_v22 = vld [vmem:[%s616_s1 + $0xb8] sm:$0xff]   ;;  %v501_v28 = vld [vmem:[%s617_s0 + $0x20] ss:$12 sps:$4 sm:$0xff]  }
   0x9   :  { %456 = vmatpush3.bf16.msra.mxu1 %v478_v5  ;;  %v493_v20 = vld [vmem:[%s616_s1 + $0xb0] sm:$0xff]   ;;  %v495_v25 = vld [vmem:[%s616_s1 + $0x38] sm:$0xff]  }
   0xa   :  { %457 = vmatprep.subr.bf16.mxu1 %v481_v8  ;;  %v499_v23 = vld [vmem:[%s617_s0 + $0x4] ss:$12 sps:$4 sm:$0xff]   ;;  %v500_v24 = vld [vmem:[%s617_s0 + $0x8] ss:$12 sps:$4 sm:$0xff]  }
   0xb   :  { %420 = vmatpush3.bf16.msra.mxu0 %v480_v7  ;;  %276 = vmatprep.mubr.bf16.mxu0 %v499_v23  ;;  %v502_v27 = vld [vmem:[%s617_s0 + $0x1c] ss:$12 sps:$4 sm:$0xff]   ;;  %v504_v29 = vld [vmem:[%s617_s0 + $0x18] ss:$12 sps:$4 sm:$0xff]  }
   0xc   :  { %421 = vmatprep.subr.bf16.mxu0 %v482_v9  ;;  %469 = vmatprep.mubr.bf16.mxu1 %v500_v24 }
   0xd   :  { %458 = vmatpush3.bf16.msra.mxu1 %v481_v8 }
   0xe   :  { %459 = vmatprep.subr.bf16.mxu1 %v484_v11 }
   0xf   :  { %422 = vmatpush3.bf16.msra.mxu0 %v483_v10 }
  0x10   :  { %423 = vmatprep.subr.bf16.mxu0 %v485_v12 }
  0x11   :  { %460 = vmatpush3.bf16.msra.mxu1 %v484_v11 }
  0x12   :  { %461 = vmatprep.subr.bf16.mxu1 %v487_v13 }
  0x13   :  { %424 = vmatpush3.bf16.msra.mxu0 %v486_v14 }
  0x14   :  { %425 = vmatprep.subr.bf16.mxu0 %v488_v15 }
  0x15   :  { %462 = vmatpush3.bf16.msra.mxu1 %v487_v13 }
  0x16   :  { %463 = vmatprep.subr.bf16.mxu1 %v490_v16 }
  0x17   :  { %426 = vmatpush3.bf16.msra.mxu0 %v489_v17 }
  0x18   :  { %427 = vmatprep.subr.bf16.mxu0 %v491_v18 }
  0x19   :  { %464 = vmatpush3.bf16.msra.mxu1 %v490_v16 }
  0x1a   :  { %465 = vmatprep.subr.bf16.mxu1 %v493_v20 }
  0x1b   :  { %428 = vmatpush3.bf16.msra.mxu0 %v492_v19 }
  0x1c   :  { %429 = vmatprep.subr.bf16.mxu0 %v494_v21 }
  0x1d   :  { %466 = vmatpush3.bf16.msra.mxu1 %v493_v20 }
  0x1e   :  { %467 = vmatprep.subr.bf16.mxu1 %v496_v22 }
  0x1f   :  { %430 = vmatpush3.bf16.msra.mxu0 %v495_v25 }
  0x21   :  { %468 = vmatpush3.bf16.msra.mxu1 %v496_v22 }
  0x22   :  { %277 = vmatmul.mubr.bf16.vlgmr.msra.gmra.mrb[0].mxu0 %v497_v26 }
  0x23   :  { %284 = vmatprep.mubr.bf16.mxu0 %v502_v27 }
  0x24   :  { %470 = vmatmul.mubr.bf16.vlgmr.msra.gmra.mrb[0].mxu1 %v501_v28 }
  0x2a   :  { %285 = vmatmul.mubr.bf16.gmra.mrb[4].mxu0 %v504_v29 }
  0xf5   :  { %v431_v30 = vpop.f32.mrb[0].mxu0 }
  0xf6   :  { %v432_v31 = vpop.f32.mrb[1].mxu0 }
  0xf7   :  { %v433_v32 = vadd.f32 %v432_v31, %v431_v30  ;;  %v434_v33 = vpop.f32.mrb[2].mxu0  ;;  %v471_v34 = vpop.f32.mrb[0].mxu1 }
  0xf8   :  { %v435_v35 = vpop.f32.mrb[3].mxu0  ;;  %v327_v36 = vpop.f32.mrb[1].mxu1 }
  0xf9   :  { %v436_v37 = vadd.f32 %v435_v35, %v434_v33  ;;  %v328_v38 = vadd.f32 %v433_v32, %v327_v36  ;;  %v472_v39 = vpop.f32.mrb[2].mxu1 }
  0xfa   :  { %v330_v40 = vpop.f32.mrb[3].mxu1 }
  0xfb   :  { %v331_v41 = vadd.f32 %v436_v37, %v330_v40 }
  0xfd   :  { %v407_v42 = vpack.c.bf16 %v331_v41, %v328_v38  ;;  %v437_v43 = vpop.f32.mrb[4].mxu0 }
  0xfe   :  { %v438_v44 = vpop.f32.mrb[5].mxu0 }
  0xff   :  { %408 = vst [vmem:[%s618_s2] sm:$0xff] %v407_v42   ;;  %v439_v45 = vadd.f32 %v438_v44, %v437_v43  ;;  %v440_v46 = vpop.f32.mrb[6].mxu0 }
 0x100   :  { %v441_v47 = vpop.f32.mrb[7].mxu0 }
 0x101   :  { %v336_v48 = vadd.f32 %v471_v34, %v439_v45  ;;  %v442_v49 = vadd.f32 %v441_v47, %v440_v46 }
 0x103   :  { %v339_v50 = vadd.f32 %v472_v39, %v442_v49 }
 0x105   :  { %v412_v51 = vpack.c.bf16 %v339_v50, %v336_v48 }
 0x107   :  { %414 = vst [vmem:[%s618_s2 + $0x8] sm:$0xff] %v412_v51  }

// kernel: residual_generator_forward.35
= control target key start
LH: loop header
LB: loop body
LE: loop exit
PB: predicated region body
PF: predicated region fallthrough
CT: control target
= control target key end

     0   :  { %s517_s15 = smov 0   ;;  %s548_s0 = inlined_call_operand.vmem [shape: bf16[32,32], index: 0, kind: input, shape index: {}]   ;;  %s549_s1 = inlined_call_operand.vmem [shape: f32[32,1], index: 1, kind: input, shape index: {}]   ;;  %s550_s2 = inlined_call_operand.vmem [shape: f32[32,1], index: 2, kind: input, shape index: {}]   ;;  %s551_s3 = inlined_call_operand.vmem [shape: bf16[32,32], index: 3, kind: input, shape index: {}]   ;;  %s552_s4 = inlined_call_operand.vmem [shape: bf16[32,32], index: 4, kind: output, shape index: {}]  }
   0x1 LB: > { %s439_s16 = sadd.s32 4294967295, %s489_s15   ;;  %p443_p0 = scmp.ge.s32.totalorder %s489_s15, 1  ;;  %s489_s15 = sphi %s517_s15, %s14_s15  }
   0x2   : > { %p196_p1 = scmp.lt.s32.totalorder %s489_s15, 3 }
   0x4   : > { %p197_p2 = pnand %p443_p0, %p196_p1 }
   0x5   : > { %s444_s17 = sshll.u32 (!%p197_p2), %s439_s16, 1  ;;  %v491_v0 = vmov (!%p197_p2), 0   ;;  %vm271_vm0 = vcmask (!%p197_p2), 261120   ;;  %vm344_vm1 = vcmask (!%p197_p2), 257024  }
   0x6   : > { %200 = sbr.rel (%p197_p2) target bundleno = 196 (0xc4), region = 36  ;;  %p238_p3 = scmp.lt.s32.totalorder (!%p197_p2), %s444_s17, 3  ;;  %478 = vset.pattern.permute.xlu1 (!%p197_p2), %v491_v0  ;;  %477 = vset.pattern.permute.xlu0 (!%p197_p2), %v491_v0 }
   0xd   : > { %s554_s17 = smov (!%p238_p3, %s444_s17), 3 }
   0xe   : > { %s525_s18 = sshll.u32 %s554_s17, 2  ;;  %s447_s22 = sshll.u32 %s554_s17, 3 }
   0xf   : > { %s241_s21 = scalar_lea.vmem %s548_s0, %s525_s18  ;;  %s247_s25 = scalar_lea.vmem %s549_s1, %s447_s22 }
  0x10   : > { %v461_v1 = vld [vmem:[%s241_s21] sm:$0xff]   ;;  %v303_v10 = vld [vmem:[%s247_s25 + $0x8] sm:$0xff]  ;;  %s253_s28 = scalar_lea.vmem %s550_s2, %s447_s22  ;;  %s259_s5 = scalar_lea.vmem %s551_s3, %s525_s18 }
  0x11   : > { %v462_v2 = vunpack.c.l.bf16 %v461_v1  ;;  %v463_v3 = vunpack.c.h.bf16 %v461_v1  ;;  %v302_v11 = vld [vmem:[%s247_s25] sm:$0xff]  ;;  %v317_v13 = vld [vmem:[%s253_s28 + $0x8] sm:$0xff]  ;;  %s265_s8 = scalar_lea.vmem %s552_s4, %s525_s18 }
  0x12   : > { %v316_v12 = vld [vmem:[%s253_s28] sm:$0xff] }
  0x13   : > { %v272_v4 = vsel %vm271_vm0, %v462_v2, 0.0  ;;  %v278_v5 = vmul.f32 %v462_v2, %v462_v2  ;;  %v279_v6 = vmul.f32 %v463_v3, %v463_v3  ;;  %v275_v8 = vsel %vm271_vm0, %v463_v3, 0.0  ;;  %v465_v31 = vld [vmem:[%s259_s5] sm:$0xff]  }
  0x14   : > { %273 = vadd.xlane.f32.xlu0 %v272_v4  ;;  %v466_v36 = vunpack.c.l.bf16 %v465_v31  ;;  %v467_v42 = vunpack.c.h.bf16 %v465_v31 }
  0x15   : > { %v280_v7 = vsel %vm271_vm0, %v278_v5, 0.0  ;;  %v283_v9 = vsel %vm271_vm0, %v279_v6, 0.0 }
  0x16   : > { %281 = vadd.xlane.f32.xlu1 %v280_v7 }
  0x18   : > { %276 = vadd.xlane.f32.xlu0 %v275_v8 }
  0x1a   : > { %284 = vadd.xlane.f32.xlu1 %v283_v9 }
  0x2b   : > { %311 = vperm.xlu1 %478, %v303_v10  }
  0x2e   : > { %306 = vperm.xlu0 %477, %v302_v11  }
  0x2f   : > { %320 = vperm.xlu1 %478, %v316_v12  }
  0x33   : > { %325 = vperm.xlu1 %478, %v317_v13  }
  0xa1   : > { %v274_v14 = vpop.xlane.xlu0 %273 }
  0xa2   : > { %v286_v15 = vmul.f32 0.03125, %v274_v14 }
  0xa3   : > { %v282_v16 = vpop.xlane.xlu1 %281 }
  0xa4   : > { %v290_v17 = vmul.f32 %v286_v15, %v286_v15  ;;  %v288_v18 = vmul.f32 0.03125, %v282_v16  ;;  %v294_v29 = vsub.f32 %v462_v2, %v286_v15 }
  0xa5   : > { %v277_v19 = vpop.xlane.xlu0 %276 }
  0xa6   : > { %v292_v20 = vsub.f32 %v288_v18, %v290_v17  ;;  %v287_v21 = vmul.f32 0.03125, %v277_v19 }
  0xa7   : > { %v285_v22 = vpop.xlane.xlu1 %284 }
  0xa8   : > { %v296_v23 = vadd.f32 1e-05, %v292_v20  ;;  %v291_v24 = vmul.f32 %v287_v21, %v287_v21  ;;  %v289_v25 = vmul.f32 0.03125, %v285_v22  ;;  %v295_v35 = vsub.f32 %v463_v3, %v287_v21 }
  0xaa   : > { %479 = vrsqrt.f32 %v296_v23  ;;  %v293_v26 = vsub.f32 %v289_v25, %v291_v24 }
  0xab   : > { %v312_v28 = vpop.permute.xlu1 %311 }
  0xac   : > { %v297_v27 = vadd.f32 1e-05, %v293_v26 }
  0xad   : > { %v307_v32 = vpop.permute.xlu0 %306 }
  0xae   : > { %481 = vrsqrt.f32 %v297_v27 }
  0xaf   : > { %v321_v34 = vpop.permute.xlu1 %320 }
  0xb3   : > { %v326_v44 = vpop.permute.xlu1 %325 }
  0xb4   : > { %v480_v30 = vpop.eup %479 }
  0xb5   : > { %v300_v33 = vmul.f32 %v480_v30, %v294_v29 }
  0xb7   : > { %v314_v37 = vmul.f32 %v307_v32, %v300_v33 }
  0xb8   : > { %v482_v38 = vpop.eup %481 }
  0xb9   : > { %v301_v39 = vmul.f32 %v482_v38, %v295_v35  ;;  %v328_v40 = vadd.f32 %v321_v34, %v314_v37 }
  0xbb   : > { %v315_v41 = vmul.f32 %v312_v28, %v301_v39  ;;  %v334_v43 = vadd.f32 %v466_v36, %v328_v40 }
  0xbd   : > { %v329_v45 = vadd.f32 %v326_v44, %v315_v41  ;;  %v458_v46 = vpack.c.bf16 %v334_v43, %v334_v43 }
  0xbf   : > { %v335_v47 = vadd.f32 %v467_v42, %v329_v45  ;;  %345 = vst.msk [vmem:[%s265_s8] sm:$0xf] %vm344_vm1, %v458_v46 }
  0xc1   : > { %v459_v48 = vpack.c.bf16 %v335_v47, %v335_v47 }
  0xc3   : > { %346 = vst.msk [vmem:[%s265_s8 + $0x4] sm:$0xf] %vm344_vm1, %v459_v48 }
  0xc4 PF: > { %s14_s15 = sadd.s32 1, %s489_s15  }
  0xc5   : > { %p11_p4 = scmp.ge.s32.totalorder %s14_s15, 4  }
  0xc7   :  { %13 = sbr.rel (!%p11_p4) target bundleno = 1 (0x1), region = 75 }

// kernel: residual_generator_forward.46
= control target key start
LH: loop header
LB: loop body
LE: loop exit
PB: predicated region body
PF: predicated region fallthrough
CT: control target
= control target key end

     0   :  { %v170_v0 = vmov 0.0   ;;  %vm171_vm0 = vmmov 0   ;;  %s217_s1 = inlined_call_operand.vmem [shape: bf16[128,128], index: 1, kind: input, shape index: {}]   ;;  %s218_s0 = inlined_call_operand.vmem [shape: bf16[8,128], index: 0, kind: input, shape index: {}]   ;;  %s219_s2 = inlined_call_operand.vmem [shape: bf16[8,128], index: 2, kind: output, shape index: {}]  }
   0x1   :  { %140 = vmatprep.subr.bf16.mxu0 %v170_v0  ;;  %v162_v1 = vld [vmem:[%s217_s1] sm:$0xff]   ;;  %156 = vmatprep.mubr.msk.bf16.mxu0 %vm171_vm0, %v170_v0  ;;  %v163_v2 = vld [vmem:[%s217_s1 + $0x8] sm:$0xff]   ;;  %v164_v3 = vld [vmem:[%s217_s1 + $0x10] sm:$0xff]  }
   0x2   :  { %141 = vmatpush3.bf16.msra.mxu0 %v162_v1  ;;  %v165_v4 = vld [vmem:[%s217_s1 + $0x18] sm:$0xff]   ;;  %v166_v5 = vld [vmem:[%s217_s1 + $0x20] sm:$0xff]   ;;  %v167_v6 = vld [vmem:[%s217_s1 + $0x28] sm:$0xff]  }
   0x3   :  { %142 = vmatprep.subr.bf16.mxu0 %v170_v0  ;;  %v168_v7 = vld [vmem:[%s217_s1 + $0x30] sm:$0xff]   ;;  %v169_v8 = vld [vmem:[%s217_s1 + $0x38] sm:$0xff]   ;;  %v12_v9 = vld [vmem:[%s218_s0] sm:$0xf] }
   0x6   :  { %143 = vmatpush3.bf16.msra.mxu0 %v163_v2 }
   0x7   :  { %144 = vmatprep.subr.bf16.mxu0 %v170_v0 }
   0xa   :  { %145 = vmatpush3.bf16.msra.mxu0 %v164_v3 }
   0xb   :  { %146 = vmatprep.subr.bf16.mxu0 %v170_v0 }
   0xe   :  { %147 = vmatpush3.bf16.msra.mxu0 %v165_v4 }
   0xf   :  { %148 = vmatprep.subr.bf16.mxu0 %v170_v0 }
  0x12   :  { %149 = vmatpush3.bf16.msra.mxu0 %v166_v5 }
  0x13   :  { %150 = vmatprep.subr.bf16.mxu0 %v170_v0 }
  0x16   :  { %151 = vmatpush3.bf16.msra.mxu0 %v167_v6 }
  0x17   :  { %152 = vmatprep.subr.bf16.mxu0 %v170_v0 }
  0x1a   :  { %153 = vmatpush3.bf16.msra.mxu0 %v168_v7 }
  0x1b   :  { %154 = vmatprep.subr.bf16.mxu0 %v170_v0 }
  0x1e   :  { %155 = vmatpush3.bf16.msra.mxu0 %v169_v8 }
  0x21   :  { %157 = vmatmul.mubr.bf16.vlgmr.msra.gmra.mrb[0].mxu0 %v12_v9 }
  0xf4   :  { %v111_v10 = vpop.f32.mrb[0].mxu0 }
  0xf5   :  { %v117_v11 = vpack.c.bf16 %v111_v10, %v111_v10  ;;  %v158_v12 = vpop.f32.mrb[1].mxu0 }
  0xf6   :  { %v114_v13 = vpop.f32.mrb[2].mxu0 }
  0xf7   :  { %118 = vst [vmem:[%s219_s2] sm:$0xf] %v117_v11  ;;  %v159_v14 = vpop.f32.mrb[3].mxu0 }

// kernel: residual_generator_forward.51
= control target key start
LH: loop header
LB: loop body
LE: loop exit
PB: predicated region body
PF: predicated region fallthrough
CT: control target
= control target key end

     0   :  { %v43_v0 = vmov 0   ;;  %v44_v2 = vmov 839922192   ;;  %v21_v4 = vlaneseq  ;;  %s75_s1 = inlined_call_operand.vmem [shape: f32[3,1], index: 1, kind: input, shape index: {}]   ;;  %s76_s0 = inlined_call_operand.vmem [shape: f32[3,512], index: 0, kind: input, shape index: {}]   ;;  %s77_s2 = inlined_call_operand.vmem [shape: f32[3,512], index: 2, kind: output, shape index: {}]  }
   0x1   :  { %38 = vset.pattern.permute.xlu0 %v43_v0  ;;  %v13_v1 = vld [vmem:[%s75_s1] sm:$0x7]  ;;  %v19_v3 = vunpack.c.l.s4 %v44_v2  ;;  %v12_v10 = vld [vmem:[%s76_s0 + $0x8] sm:$0x77] }
   0x2   :  { %16 = vperm.xlu0 %38, %v13_v1   ;;  %v22_v6 = vshrl.u32 %v21_v4, 7  ;;  %v11_v9 = vld [vmem:[%s76_s0] sm:$0x77] }
   0x3   :  { %v20_v5 = vunpack.c.0.s8 %v19_v3 }
   0x5   :  { %v23_v7 = vsub.s32 %v20_v5, %v22_v6 }
  0x81   :  { %v17_v8 = vpop.permute.xlu0 %16 }
  0x82   :  { %v24_v11 = vrot.slane %v17_v8, %v23_v7 }
  0x84   :  { %v26_v12 = vadd.f32 %v24_v11, %v11_v9  ;;  %v27_v13 = vadd.f32 %v24_v11, %v12_v10 }
  0x86   :  { %39 = vtanh.f32 %v26_v12 }
  0x87   :  { %41 = vtanh.f32 %v27_v13 }
  0x90   :  { %v40_v14 = vpop.eup %39 }
  0x91   :  { %v42_v15 = vpop.eup %41  ;;  %30 = vst [vmem:[%s77_s2] sm:$0x77] %v40_v14 }
  0x92   :  { %31 = vst [vmem:[%s77_s2 + $0x8] sm:$0x77] %v42_v15 }

// kernel: residual_generator_forward.50
= control target key start
LH: loop header
LB: loop body
LE: loop exit
PB: predicated region body
PF: predicated region fallthrough
CT: control target
= control target key end

     0   :  { %s1726_s1 = inlined_call_operand.vmem [shape: bf16[512,512], index: 1, kind: input, shape index: {}]   ;;  %s1727_s0 = inlined_call_operand.vmem [shape: bf16[8,512], index: 0, kind: input, shape index: {}]   ;;  %s1728_s2 = inlined_call_operand.vmem [shape: f32[8,512], index: 2, kind: output, shape index: {}]  }
   0x1   :  { %v1107_v0 = vld [vmem:[%s1726_s1 + $0x4] ss:$16 sps:$4 sm:$0xff]   ;;  %v1109_v1 = vld [vmem:[%s1726_s1 + $0xc] ss:$16 sps:$4 sm:$0xff]   ;;  %v1111_v2 = vld [vmem:[%s1726_s1] ss:$16 sps:$4 sm:$0xff]  }
   0x2   :  { %795 = vmatprep.subr.bf16.mxu0 %v1107_v0  ;;  %v1112_v3 = vld [vmem:[%s1726_s1 + $0x8] ss:$16 sps:$4 sm:$0xff]   ;;  %877 = vmatprep.subr.bf16.mxu1 %v1109_v1  ;;  %v1113_v4 = vld [vmem:[%s1726_s1 + $0x24] ss:$16 sps:$4 sm:$0xff]   ;;  %v1115_v5 = vld [vmem:[%s1726_s1 + $0x2c] ss:$16 sps:$4 sm:$0xff]  }
   0x3   :  { %796 = vmatpush1.bf16.msra.mxu0 %v1111_v2  ;;  %878 = vmatpush1.bf16.msra.mxu1 %v1112_v3  ;;  %v1117_v6 = vld [vmem:[%s1726_s1 + $0x20] ss:$16 sps:$4 sm:$0xff]   ;;  %v1118_v7 = vld [vmem:[%s1726_s1 + $0x28] ss:$16 sps:$4 sm:$0xff]   ;;  %v1119_v8 = vld [vmem:[%s1726_s1 + $0x44] ss:$16 sps:$4 sm:$0xff]  }
   0x4   :  { %797 = vmatprep.subr.bf16.mxu0 %v1113_v4  ;;  %879 = vmatprep.subr.bf16.mxu1 %v1115_v5  ;;  %v1121_v9 = vld [vmem:[%s1726_s1 + $0x4c] ss:$16 sps:$4 sm:$0xff]   ;;  %v1123_v10 = vld [vmem:[%s1726_s1 + $0x40] ss:$16 sps:$4 sm:$0xff]   ;;  %v1124_v11 = vld [vmem:[%s1726_s1 + $0x48] ss:$16 sps:$4 sm:$0xff]  }
   0x5   :  { %v1125_v12 = vld [vmem:[%s1726_s1 + $0x64] ss:$16 sps:$4 sm:$0xff]   ;;  %v1127_v13 = vld [vmem:[%s1726_s1 + $0x6c] ss:$16 sps:$4 sm:$0xff]   ;;  %v1129_v14 = vld [vmem:[%s1726_s1 + $0x60] ss:$16 sps:$4 sm:$0xff]  }
   0x6   :  { %v1130_v15 = vld [vmem:[%s1726_s1 + $0x68] ss:$16 sps:$4 sm:$0xff]   ;;  %v1131_v16 = vld [vmem:[%s1726_s1 + $0x84] ss:$16 sps:$4 sm:$0xff]   ;;  %v1133_v17 = vld [vmem:[%s1726_s1 + $0x8c] ss:$16 sps:$4 sm:$0xff]  }
   0x7   :  { %798 = vmatpush1.bf16.msra.mxu0 %v1117_v6  ;;  %880 = vmatpush1.bf16.msra.mxu1 %v1118_v7  ;;  %v1135_v18 = vld [vmem:[%s1726_s1 + $0x80] ss:$16 sps:$4 sm:$0xff]   ;;  %v1136_v19 = vld [vmem:[%s1726_s1 + $0x88] ss:$16 sps:$4 sm:$0xff]   ;;  %v1137_v20 = vld [vmem:[%s1726_s1 + $0xa4] ss:$16 sps:$4 sm:$0xff]  }
   0x8   :  { %799 = vmatprep.subr.bf16.mxu0 %v1119_v8  ;;  %881 = vmatprep.subr.bf16.mxu1 %v1121_v9  ;;  %v1139_v21 = vld [vmem:[%s1726_s1 + $0xac] ss:$16 sps:$4 sm:$0xff]   ;;  %v1141_v22 = vld [vmem:[%s1726_s1 + $0xa0] ss:$16 sps:$4 sm:$0xff]   ;;  %v1142_v23 = vld [vmem:[%s1726_s1 + $0xa8] ss:$16 sps:$4 sm:$0xff]  }
   0x9   :  { %v1143_v24 = vld [vmem:[%s1726_s1 + $0xc4] ss:$16 sps:$4 sm:$0xff]   ;;  %v1145_v25 = vld [vmem:[%s1726_s1 + $0xcc] ss:$16 sps:$4 sm:$0xff]   ;;  %v1147_v26 = vld [vmem:[%s1726_s1 + $0xc0] ss:$16 sps:$4 sm:$0xff]  }
   0xa   :  { %v1148_v27 = vld [vmem:[%s1726_s1 + $0xc8] ss:$16 sps:$4 sm:$0xff]   ;;  %v1149_v28 = vld [vmem:[%s1726_s1 + $0xe4] ss:$16 sps:$4 sm:$0xff]   ;;  %v1151_v29 = vld [vmem:[%s1726_s1 + $0xec] ss:$16 sps:$4 sm:$0xff]  }
   0xb   :  { %800 = vmatpush1.bf16.msra.mxu0 %v1123_v10  ;;  %882 = vmatpush1.bf16.msra.mxu1 %v1124_v11  ;;  %v1153_v30 = vld [vmem:[%s1726_s1 + $0xe0] ss:$16 sps:$4 sm:$0xff]   ;;  %v1154_v31 = vld [vmem:[%s1726_s1 + $0xe8] ss:$16 sps:$4 sm:$0xff]   ;;  %v1155_v32 = vld [vmem:[%s1726_s1 + $0x104] ss:$16 sps:$4 sm:$0xff]  }
   0xc   :  { %801 = vmatprep.subr.bf16.mxu0 %v1125_v12  ;;  %883 = vmatprep.subr.bf16.mxu1 %v1127_v13  ;;  %v1157_v33 = vld [vmem:[%s1726_s1 + $0x10c] ss:$16 sps:$4 sm:$0xff]   ;;  %v1159_v34 = vld [vmem:[%s1726_s1 + $0x100] ss:$16 sps:$4 sm:$0xff]   ;;  %v1160_v35 = vld [vmem:[%s1726_s1 + $0x108] ss:$16 sps:$4 sm:$0xff]  }
   0xd   :  { %v1161_v36 = vld [vmem:[%s1726_s1 + $0x124] ss:$16 sps:$4 sm:$0xff]   ;;  %v1163_v37 = vld [vmem:[%s1726_s1 + $0x12c] ss:$16 sps:$4 sm:$0xff]   ;;  %v1165_v38 = vld [vmem:[%s1726_s1 + $0x120] ss:$16 sps:$4 sm:$0xff]  }
   0xe   :  { %v1166_v39 = vld [vmem:[%s1726_s1 + $0x128] ss:$16 sps:$4 sm:$0xff]   ;;  %v1167_v40 = vld [vmem:[%s1726_s1 + $0x144] ss:$16 sps:$4 sm:$0xff]   ;;  %v1169_v41 = vld [vmem:[%s1726_s1 + $0x14c] ss:$16 sps:$4 sm:$0xff]  }
   0xf   :  { %802 = vmatpush1.bf16.msra.mxu0 %v1129_v14  ;;  %884 = vmatpush1.bf16.msra.mxu1 %v1130_v15  ;;  %v1171_v42 = vld [vmem:[%s1726_s1 + $0x140] ss:$16 sps:$4 sm:$0xff]   ;;  %v1172_v43 = vld [vmem:[%s1726_s1 + $0x148] ss:$16 sps:$4 sm:$0xff]   ;;  %v1173_v44 = vld [vmem:[%s1726_s1 + $0x164] ss:$16 sps:$4 sm:$0xff]  }
  0x10   :  { %803 = vmatprep.subr.bf16.mxu0 %v1131_v16  ;;  %885 = vmatprep.subr.bf16.mxu1 %v1133_v17  ;;  %v1175_v45 = vld [vmem:[%s1726_s1 + $0x16c] ss:$16 sps:$4 sm:$0xff]   ;;  %v11_v46 = vld [vmem:[%s1727_s0] sm:$0xff]  ;;  %v1178_v49 = vld [vmem:[%s1726_s1 + $0x168] ss:$16 sps:$4 sm:$0xff]  }
  0x11   :  { %v968_v47 = vcombine.high %v11_v46, %v11_v46  ;;  %v1177_v48 = vld [vmem:[%s1726_s1 + $0x160] ss:$16 sps:$4 sm:$0xff]   ;;  %v1179_v50 = vld [vmem:[%s1726_s1 + $0x184] ss:$16 sps:$4 sm:$0xff]   ;;  %v1181_v51 = vld [vmem:[%s1726_s1 + $0x18c] ss:$16 sps:$4 sm:$0xff]   ;;  %v967_v5 = vcombine.low %v11_v46, %v11_v46 }
  0x12   :  { %v1183_v52 = vld [vmem:[%s1726_s1 + $0x180] ss:$16 sps:$4 sm:$0xff]   ;;  %v1184_v53 = vld [vmem:[%s1726_s1 + $0x188] ss:$16 sps:$4 sm:$0xff]   ;;  %v1185_v54 = vld [vmem:[%s1726_s1 + $0x1a4] ss:$16 sps:$4 sm:$0xff]  }
  0x13   :  { %804 = vmatpush1.bf16.msra.mxu0 %v1135_v18  ;;  %886 = vmatpush1.bf16.msra.mxu1 %v1136_v19  ;;  %v1187_v55 = vld [vmem:[%s1726_s1 + $0x1ac] ss:$16 sps:$4 sm:$0xff]   ;;  %v1189_v56 = vld [vmem:[%s1726_s1 + $0x1a0] ss:$16 sps:$4 sm:$0xff]   ;;  %v1190_v57 = vld [vmem:[%s1726_s1 + $0x1a8] ss:$16 sps:$4 sm:$0xff]  }
  0x14   :  { %805 = vmatprep.subr.bf16.mxu0 %v1137_v20  ;;  %887 = vmatprep.subr.bf16.mxu1 %v1139_v21  ;;  %v1191_v58 = vld [vmem:[%s1726_s1 + $0x1c4] ss:$16 sps:$4 sm:$0xff]   ;;  %v1193_v59 = vld [vmem:[%s1726_s1 + $0x1cc] ss:$16 sps:$4 sm:$0xff]   ;;  %v1195_v60 = vld [vmem:[%s1726_s1 + $0x1c0] ss:$16 sps:$4 sm:$0xff]  }
  0x15   :  { %827 = vmatprep.mubr.bf16.mxu0 %v968_v47  ;;  %909 = vmatprep.mubr.bf16.mxu1 %v968_v47  ;;  %v1196_v61 = vld [vmem:[%s1726_s1 + $0x1c8] ss:$16 sps:$4 sm:$0xff]   ;;  %v1197_v62 = vld [vmem:[%s1726_s1 + $0x1e4] ss:$16 sps:$4 sm:$0xff]   ;;  %v1199_v63 = vld [vmem:[%s1726_s1 + $0x1ec] ss:$16 sps:$4 sm:$0xff]  }
  0x16   :  { %v1201_v0 = vld [vmem:[%s1726_s1 + $0x1e0] ss:$16 sps:$4 sm:$0xff]   ;;  %v1202_v1 = vld [vmem:[%s1726_s1 + $0x1e8] ss:$16 sps:$4 sm:$0xff]   ;;  %v1208_v2 = vld [vmem:[%s1726_s1 + $0x204] ss:$16 sps:$4 sm:$0xff]  }
  0x17   :  { %806 = vmatpush1.bf16.msra.mxu0 %v1141_v22  ;;  %888 = vmatpush1.bf16.msra.mxu1 %v1142_v23  ;;  %v1211_v3 = vld [vmem:[%s1726_s1 + $0x20c] ss:$16 sps:$4 sm:$0xff]   ;;  %v1206_v6 = vld [vmem:[%s1726_s1 + $0x200] ss:$16 sps:$4 sm:$0xff]   ;;  %v1209_v7 = vld [vmem:[%s1726_s1 + $0x208] ss:$16 sps:$4 sm:$0xff]  }
  0x18   :  { %807 = vmatprep.subr.bf16.mxu0 %v1143_v24  ;;  %889 = vmatprep.subr.bf16.mxu1 %v1145_v25  ;;  %v1522_v4 = vld [vmem:[%s1727_s0 + $0x8] sm:$0xff]  ;;  %v1214_v8 = vld [vmem:[%s1726_s1 + $0x224] ss:$16 sps:$4 sm:$0xff]   ;;  %v1212_v11 = vld [vmem:[%s1726_s1 + $0x220] ss:$16 sps:$4 sm:$0xff]  }
  0x19   :  { %v1217_v9 = vld [vmem:[%s1726_s1 + $0x22c] ss:$16 sps:$4 sm:$0xff]   ;;  %v970_v10 = vcombine.high %v1522_v4, %v1522_v4  ;;  %v1215_v12 = vld [vmem:[%s1726_s1 + $0x228] ss:$16 sps:$4 sm:$0xff]   ;;  %v1220_v13 = vld [vmem:[%s1726_s1 + $0x244] ss:$16 sps:$4 sm:$0xff]  }
  0x1a   :  { %v1223_v14 = vld [vmem:[%s1726_s1 + $0x24c] ss:$16 sps:$4 sm:$0xff]   ;;  %v1218_v15 = vld [vmem:[%s1726_s1 + $0x240] ss:$16 sps:$4 sm:$0xff]   ;;  %v1221_v16 = vld [vmem:[%s1726_s1 + $0x248] ss:$16 sps:$4 sm:$0xff]  }
  0x1b   :  { %808 = vmatpush1.bf16.msra.mxu0 %v1147_v26  ;;  %890 = vmatpush1.bf16.msra.mxu1 %v1148_v27  ;;  %v1226_v17 = vld [vmem:[%s1726_s1 + $0x264] ss:$16 sps:$4 sm:$0xff]   ;;  %v1229_v18 = vld [vmem:[%s1726_s1 + $0x26c] ss:$16 sps:$4 sm:$0xff]   ;;  %v1224_v19 = vld [vmem:[%s1726_s1 + $0x260] ss:$16 sps:$4 sm:$0xff]  }
  0x1c   :  { %809 = vmatprep.subr.bf16.mxu0 %v1149_v28  ;;  %891 = vmatprep.subr.bf16.mxu1 %v1151_v29  ;;  %v1227_v20 = vld [vmem:[%s1726_s1 + $0x268] ss:$16 sps:$4 sm:$0xff]   ;;  %v1232_v21 = vld [vmem:[%s1726_s1 + $0x284] ss:$16 sps:$4 sm:$0xff]   ;;  %v1235_v22 = vld [vmem:[%s1726_s1 + $0x28c] ss:$16 sps:$4 sm:$0xff]  }
  0x1d   :  { %v1230_v23 = vld [vmem:[%s1726_s1 + $0x280] ss:$16 sps:$4 sm:$0xff]   ;;  %v1233_v24 = vld [vmem:[%s1726_s1 + $0x288] ss:$16 sps:$4 sm:$0xff]   ;;  %v1238_v25 = vld [vmem:[%s1726_s1 + $0x2a4] ss:$16 sps:$4 sm:$0xff]  }
  0x1e   :  { %v1241_v26 = vld [vmem:[%s1726_s1 + $0x2ac] ss:$16 sps:$4 sm:$0xff]   ;;  %v1236_v27 = vld [vmem:[%s1726_s1 + $0x2a0] ss:$16 sps:$4 sm:$0xff]   ;;  %v1239_v28 = vld [vmem:[%s1726_s1 + $0x2a8] ss:$16 sps:$4 sm:$0xff]  }
  0x1f   :  { %810 = vmatpush1.bf16.msra.mxu0 %v1153_v30  ;;  %892 = vmatpush1.bf16.msra.mxu1 %v1154_v31  ;;  %v1244_v29 = vld [vmem:[%s1726_s1 + $0x2c4] ss:$16 sps:$4 sm:$0xff]   ;;  %v1247_v30 = vld [vmem:[%s1726_s1 + $0x2cc] ss:$16 sps:$4 sm:$0xff]   ;;  %v1242_v31 = vld [vmem:[%s1726_s1 + $0x2c0] ss:$16 sps:$4 sm:$0xff]  }
  0x20   :  { %811 = vmatprep.subr.bf16.mxu0 %v1155_v32  ;;  %893 = vmatprep.subr.bf16.mxu1 %v1157_v33  ;;  %v1245_v32 = vld [vmem:[%s1726_s1 + $0x2c8] ss:$16 sps:$4 sm:$0xff]   ;;  %v1250_v33 = vld [vmem:[%s1726_s1 + $0x2e4] ss:$16 sps:$4 sm:$0xff]   ;;  %v1271_v46 = vld [vmem:[%s1726_s1 + $0x34c] ss:$16 sps:$4 sm:$0xff]  }
  0x21   :  { %v1266_v47 = vld [vmem:[%s1726_s1 + $0x340] ss:$16 sps:$4 sm:$0xff]  }
  0x23   :  { %812 = vmatpush1.bf16.msra.mxu0 %v1159_v34  ;;  %894 = vmatpush1.bf16.msra.mxu1 %v1160_v35  ;;  %v1253_v34 = vld [vmem:[%s1726_s1 + $0x2ec] ss:$16 sps:$4 sm:$0xff]   ;;  %v1248_v35 = vld [vmem:[%s1726_s1 + $0x2e0] ss:$16 sps:$4 sm:$0xff]  }
  0x24   :  { %813 = vmatprep.subr.bf16.mxu0 %v1161_v36  ;;  %895 = vmatprep.subr.bf16.mxu1 %v1163_v37  ;;  %v1251_v36 = vld [vmem:[%s1726_s1 + $0x2e8] ss:$16 sps:$4 sm:$0xff]   ;;  %v1256_v37 = vld [vmem:[%s1726_s1 + $0x304] ss:$16 sps:$4 sm:$0xff]  }
  0x27   :  { %814 = vmatpush1.bf16.msra.mxu0 %v1165_v38  ;;  %896 = vmatpush1.bf16.msra.mxu1 %v1166_v39  ;;  %v1259_v38 = vld [vmem:[%s1726_s1 + $0x30c] ss:$16 sps:$4 sm:$0xff]   ;;  %v1254_v39 = vld [vmem:[%s1726_s1 + $0x300] ss:$16 sps:$4 sm:$0xff]  }
  0x28   :  { %815 = vmatprep.subr.bf16.mxu0 %v1167_v40  ;;  %897 = vmatprep.subr.bf16.mxu1 %v1169_v41  ;;  %v1257_v40 = vld [vmem:[%s1726_s1 + $0x308] ss:$16 sps:$4 sm:$0xff]   ;;  %v1262_v41 = vld [vmem:[%s1726_s1 + $0x324] ss:$16 sps:$4 sm:$0xff]  }
  0x2b   :  { %816 = vmatpush1.bf16.msra.mxu0 %v1171_v42  ;;  %898 = vmatpush1.bf16.msra.mxu1 %v1172_v43  ;;  %v1265_v42 = vld [vmem:[%s1726_s1 + $0x32c] ss:$16 sps:$4 sm:$0xff]   ;;  %v1260_v43 = vld [vmem:[%s1726_s1 + $0x320] ss:$16 sps:$4 sm:$0xff]  }
  0x2c   :  { %817 = vmatprep.subr.bf16.mxu0 %v1173_v44  ;;  %899 = vmatprep.subr.bf16.mxu1 %v1175_v45  ;;  %v1263_v44 = vld [vmem:[%s1726_s1 + $0x328] ss:$16 sps:$4 sm:$0xff]   ;;  %v1268_v45 = vld [vmem:[%s1726_s1 + $0x344] ss:$16 sps:$4 sm:$0xff]  }
  0x2f   :  { %818 = vmatpush1.bf16.msra.mxu0 %v1177_v48  ;;  %900 = vmatpush1.bf16.msra.mxu1 %v1178_v49  ;;  %v1269_v48 = vld [vmem:[%s1726_s1 + $0x348] ss:$16 sps:$4 sm:$0xff]   ;;  %v1274_v49 = vld [vmem:[%s1726_s1 + $0x364] ss:$16 sps:$4 sm:$0xff]  }
  0x30   :  { %819 = vmatprep.subr.bf16.mxu0 %v1179_v50  ;;  %901 = vmatprep.subr.bf16.mxu1 %v1181_v51  ;;  %v1277_v50 = vld [vmem:[%s1726_s1 + $0x36c] ss:$16 sps:$4 sm:$0xff]   ;;  %v1272_v51 = vld [vmem:[%s1726_s1 + $0x360] ss:$16 sps:$4 sm:$0xff]  }
  0x33   :  { %820 = vmatpush1.bf16.msra.mxu0 %v1183_v52  ;;  %902 = vmatpush1.bf16.msra.mxu1 %v1184_v53  ;;  %v1275_v52 = vld [vmem:[%s1726_s1 + $0x368] ss:$16 sps:$4 sm:$0xff]   ;;  %v1280_v53 = vld [vmem:[%s1726_s1 + $0x384] ss:$16 sps:$4 sm:$0xff]  }
  0x34   :  { %821 = vmatprep.subr.bf16.mxu0 %v1185_v54  ;;  %903 = vmatprep.subr.bf16.mxu1 %v1187_v55  ;;  %v1283_v54 = vld [vmem:[%s1726_s1 + $0x38c] ss:$16 sps:$4 sm:$0xff]   ;;  %v1278_v55 = vld [vmem:[%s1726_s1 + $0x380] ss:$16 sps:$4 sm:$0xff]  }
  0x37   :  { %822 = vmatpush1.bf16.msra.mxu0 %v1189_v56  ;;  %904 = vmatpush1.bf16.msra.mxu1 %v1190_v57  ;;  %v1281_v56 = vld [vmem:[%s1726_s1 + $0x388] ss:$16 sps:$4 sm:$0xff]   ;;  %v1286_v57 = vld [vmem:[%s1726_s1 + $0x3a4] ss:$16 sps:$4 sm:$0xff]  }
  0x38   :  { %823 = vmatprep.subr.bf16.mxu0 %v1191_v58  ;;  %905 = vmatprep.subr.bf16.mxu1 %v1193_v59  ;;  %v1289_v58 = vld [vmem:[%s1726_s1 + $0x3ac] ss:$16 sps:$4 sm:$0xff]   ;;  %v1284_v59 = vld [vmem:[%s1726_s1 + $0x3a0] ss:$16 sps:$4 sm:$0xff]  }
  0x3b   :  { %824 = vmatpush1.bf16.msra.mxu0 %v1195_v60  ;;  %906 = vmatpush1.bf16.msra.mxu1 %v1196_v61  ;;  %v1287_v60 = vld [vmem:[%s1726_s1 + $0x3a8] ss:$16 sps:$4 sm:$0xff]   ;;  %v1292_v61 = vld [vmem:[%s1726_s1 + $0x3c4] ss:$16 sps:$4 sm:$0xff]  }
  0x3c   :  { %825 = vmatprep.subr.bf16.mxu0 %v1197_v62  ;;  %907 = vmatprep.subr.bf16.mxu1 %v1199_v63  ;;  %v1295_v62 = vld [vmem:[%s1726_s1 + $0x3cc] ss:$16 sps:$4 sm:$0xff]   ;;  %v1290_v63 = vld [vmem:[%s1726_s1 + $0x3c0] ss:$16 sps:$4 sm:$0xff]  }
  0x3f   :  { %826 = vmatpush1.bf16.msra.mxu0 %v1201_v0  ;;  %908 = vmatpush1.bf16.msra.mxu1 %v1202_v1  ;;  %v1293_v0 = vld [vmem:[%s1726_s1 + $0x3c8] ss:$16 sps:$4 sm:$0xff]   ;;  %v1298_v1 = vld [vmem:[%s1726_s1 + $0x3e4] ss:$16 sps:$4 sm:$0xff]  }
  0x40   :  { %836 = vmatprep.subr.bf16.mxu0 %v1208_v2  ;;  %918 = vmatprep.subr.bf16.mxu1 %v1211_v3  ;;  %v1301_v2 = vld [vmem:[%s1726_s1 + $0x3ec] ss:$16 sps:$4 sm:$0xff]   ;;  %v1296_v3 = vld [vmem:[%s1726_s1 + $0x3e0] ss:$16 sps:$4 sm:$0xff]  }
  0x42   :  { %828 = vmatmul.mubr.bf16.vlgmr.msra.gmra.mrb[0].mxu0 %v967_v5  ;;  %910 = vmatmul.mubr.bf16.vlgmr.msra.gmra.mrb[0].mxu1 %v967_v5  ;;  %v1299_v5 = vld [vmem:[%s1726_s1 + $0x3e8] ss:$16 sps:$4 sm:$0xff]  }
  0x43   :  { %837 = vmatpush1.bf16.msra.mxu0 %v1206_v6  ;;  %919 = vmatpush1.bf16.msra.mxu1 %v1209_v7  ;;  %v969_v6 = vcombine.low %v1522_v4, %v1522_v4 }
  0x44   :  { %838 = vmatprep.subr.bf16.mxu0 %v1214_v8  ;;  %920 = vmatprep.subr.bf16.mxu1 %v1217_v9 }
  0x45   :  { %868 = vmatprep.mubr.bf16.mxu0 %v970_v10  ;;  %950 = vmatprep.mubr.bf16.mxu1 %v970_v10 }
  0x47   :  { %839 = vmatpush1.bf16.msra.mxu0 %v1212_v11  ;;  %921 = vmatpush1.bf16.msra.mxu1 %v1215_v12 }
  0x48   :  { %840 = vmatprep.subr.bf16.mxu0 %v1220_v13  ;;  %922 = vmatprep.subr.bf16.mxu1 %v1223_v14 }
  0x4b   :  { %841 = vmatpush1.bf16.msra.mxu0 %v1218_v15  ;;  %923 = vmatpush1.bf16.msra.mxu1 %v1221_v16 }
  0x4c   :  { %842 = vmatprep.subr.bf16.mxu0 %v1226_v17  ;;  %924 = vmatprep.subr.bf16.mxu1 %v1229_v18 }
  0x4f   :  { %843 = vmatpush1.bf16.msra.mxu0 %v1224_v19  ;;  %925 = vmatpush1.bf16.msra.mxu1 %v1227_v20 }
  0x50   :  { %844 = vmatprep.subr.bf16.mxu0 %v1232_v21  ;;  %926 = vmatprep.subr.bf16.mxu1 %v1235_v22 }
  0x53   :  { %845 = vmatpush1.bf16.msra.mxu0 %v1230_v23  ;;  %927 = vmatpush1.bf16.msra.mxu1 %v1233_v24 }
  0x54   :  { %846 = vmatprep.subr.bf16.mxu0 %v1238_v25  ;;  %928 = vmatprep.subr.bf16.mxu1 %v1241_v26 }
  0x57   :  { %847 = vmatpush1.bf16.msra.mxu0 %v1236_v27  ;;  %929 = vmatpush1.bf16.msra.mxu1 %v1239_v28 }
  0x58   :  { %848 = vmatprep.subr.bf16.mxu0 %v1244_v29  ;;  %930 = vmatprep.subr.bf16.mxu1 %v1247_v30 }
  0x5b   :  { %849 = vmatpush1.bf16.msra.mxu0 %v1242_v31  ;;  %931 = vmatpush1.bf16.msra.mxu1 %v1245_v32 }
  0x5c   :  { %850 = vmatprep.subr.bf16.mxu0 %v1250_v33  ;;  %932 = vmatprep.subr.bf16.mxu1 %v1253_v34 }
  0x5f   :  { %851 = vmatpush1.bf16.msra.mxu0 %v1248_v35  ;;  %933 = vmatpush1.bf16.msra.mxu1 %v1251_v36 }
  0x60   :  { %852 = vmatprep.subr.bf16.mxu0 %v1256_v37  ;;  %934 = vmatprep.subr.bf16.mxu1 %v1259_v38 }
  0x63   :  { %853 = vmatpush1.bf16.msra.mxu0 %v1254_v39  ;;  %935 = vmatpush1.bf16.msra.mxu1 %v1257_v40 }
  0x64   :  { %854 = vmatprep.subr.bf16.mxu0 %v1262_v41  ;;  %936 = vmatprep.subr.bf16.mxu1 %v1265_v42 }
  0x67   :  { %855 = vmatpush1.bf16.msra.mxu0 %v1260_v43  ;;  %937 = vmatpush1.bf16.msra.mxu1 %v1263_v44 }
  0x68   :  { %856 = vmatprep.subr.bf16.mxu0 %v1268_v45  ;;  %938 = vmatprep.subr.bf16.mxu1 %v1271_v46 }
  0x6b   :  { %857 = vmatpush1.bf16.msra.mxu0 %v1266_v47  ;;  %939 = vmatpush1.bf16.msra.mxu1 %v1269_v48 }
  0x6c   :  { %858 = vmatprep.subr.bf16.mxu0 %v1274_v49  ;;  %940 = vmatprep.subr.bf16.mxu1 %v1277_v50 }
  0x6f   :  { %859 = vmatpush1.bf16.msra.mxu0 %v1272_v51  ;;  %941 = vmatpush1.bf16.msra.mxu1 %v1275_v52 }
  0x70   :  { %860 = vmatprep.subr.bf16.mxu0 %v1280_v53  ;;  %942 = vmatprep.subr.bf16.mxu1 %v1283_v54 }
  0x73   :  { %861 = vmatpush1.bf16.msra.mxu0 %v1278_v55  ;;  %943 = vmatpush1.bf16.msra.mxu1 %v1281_v56 }
  0x74   :  { %862 = vmatprep.subr.bf16.mxu0 %v1286_v57  ;;  %944 = vmatprep.subr.bf16.mxu1 %v1289_v58 }
  0x77   :  { %863 = vmatpush1.bf16.msra.mxu0 %v1284_v59  ;;  %945 = vmatpush1.bf16.msra.mxu1 %v1287_v60 }
  0x78   :  { %864 = vmatprep.subr.bf16.mxu0 %v1292_v61  ;;  %946 = vmatprep.subr.bf16.mxu1 %v1295_v62 }
  0x7b   :  { %865 = vmatpush1.bf16.msra.mxu0 %v1290_v63  ;;  %947 = vmatpush1.bf16.msra.mxu1 %v1293_v0 }
  0x7c   :  { %866 = vmatprep.subr.bf16.mxu0 %v1298_v1  ;;  %948 = vmatprep.subr.bf16.mxu1 %v1301_v2 }
  0x7f   :  { %867 = vmatpush1.bf16.msra.mxu0 %v1296_v3  ;;  %949 = vmatpush1.bf16.msra.mxu1 %v1299_v5 }
  0x82   :  { %869 = vmatmul.mubr.bf16.vlgmr.msra.gmra.mrb[0].mxu0 %v969_v6  ;;  %951 = vmatmul.mubr.bf16.vlgmr.msra.gmra.mrb[0].mxu1 %v969_v6 }
 0x155   :  { %v870_v7 = vpop.f32.mrb[0].mxu0  ;;  %v952_v8 = vpop.f32.mrb[0].mxu1 }
 0x156   :  { %959 = vst [vmem:[%s1728_s2] sm:$0xff] %v870_v7  ;;  %961 = vst [vmem:[%s1728_s2 + $0x10] sm:$0xff] %v952_v8  ;;  %v872_v9 = vpop.f32.mrb[1].mxu0  ;;  %v954_v10 = vpop.f32.mrb[1].mxu1 }
 0x157   :  { %960 = vst [vmem:[%s1728_s2 + $0x8] sm:$0xff] %v872_v9  ;;  %962 = vst [vmem:[%s1728_s2 + $0x18] sm:$0xff] %v954_v10  ;;  %v874_v4 = vpop.f32.mrb[2].mxu0  ;;  %v956_v11 = vpop.f32.mrb[2].mxu1 }
 0x158   :  { %v875_v12 = vpop.f32.mrb[3].mxu0  ;;  %v957_v13 = vpop.f32.mrb[3].mxu1 }

</bundles_post_ra>
